<compile_context>
chip_gen: v5e
topology: v5e:2x2
jax: 0.10.0
libtpu: 0.0.40
codegen_flags: <defaults>
</compile_context>

<pallas_src>
import math

import numpy as np
import jax
import jax.numpy as jnp
from jax.experimental import pallas as pl
from jax.experimental.pallas import tpu as pltpu

INPUT_SIZE = 28


def get_out_size(in_size: int, padding: int, kernel_size: int, stride: int) -> int:
    return int((in_size + 2 * padding - kernel_size) / stride + 1)


def _round_up(n: int, m: int) -> int:
    return ((n + m - 1) // m) * m


# --------------------------- fused Pallas kernel ----------------------------

def _fused_forward_kernel(x_ref, m1_ref, m2_ref, m3fc_ref, bfc_ref, o_ref):
    # (TB, 784) tile of the batch; all operands live in VMEM.
    # conv1 (lowered to matmul) + ReLU.  bf16 MXU operands, f32 accumulation.
    h = jnp.dot(x_ref[...], m1_ref[...], preferred_element_type=jnp.float32)
    h = jnp.maximum(h, 0.0).astype(jnp.bfloat16)
    # conv2 + ReLU
    h = jnp.dot(h, m2_ref[...], preferred_element_type=jnp.float32)
    h = jnp.maximum(h, 0.0).astype(jnp.bfloat16)
    # conv3 folded into fc (no nonlinearity between them) + bias
    logits = jnp.dot(h, m3fc_ref[...], preferred_element_type=jnp.float32) + bfc_ref[...]
    # numerically-stable softmax over 128 lanes; padding lanes carry bias -1e30
    # so their exp is exactly 0.  Division via EUP approx reciprocal.
    m = jnp.max(logits, axis=-1, keepdims=True)
    e = jnp.exp(logits - m)
    denom = jnp.sum(e, axis=-1, keepdims=True)
    o_ref[...] = e * pl.reciprocal(denom, approx=True)


def fused_forward(x2, M1, M2, M3fc, bfc, tb):
    """x2: (B_pad, 784) bf16, B_pad a multiple of tb.  Returns (B_pad, 128) softmax."""
    Bp, D0 = x2.shape
    N = M3fc.shape[1]
    return pl.pallas_call(
        _fused_forward_kernel,
        out_shape=jax.ShapeDtypeStruct((Bp, N), jnp.float32),
        grid=(Bp // tb,),
        in_specs=[
            pl.BlockSpec((tb, D0), lambda b: (b, 0)),
            pl.BlockSpec(M1.shape, lambda b: (0, 0)),
            pl.BlockSpec(M2.shape, lambda b: (0, 0)),
            pl.BlockSpec(M3fc.shape, lambda b: (0, 0)),
            pl.BlockSpec(bfc.shape, lambda b: (0, 0)),
        ],
        out_specs=pl.BlockSpec((tb, N), lambda b: (b, 0)),
        compiler_params=pltpu.CompilerParams(
            dimension_semantics=("parallel",)),   # batch tiles split across TCs on v7x
    )(x2, M1, M2, M3fc, bfc)


# ------------------- parameter preparation (off hot path) -------------------

def _conv_layer_matrix(K, in_size, kernel_size, stride, padding):
    """Dense (Cin*in^2, Cout*out^2) matrix reproducing one reference Conv2d layer.

    Also returns a structural mask of which flat output columns are actually
    written (the reference's `range(0, pad_size - k, stride)` can skip the last
    output row/column, leaving those columns all-zero).
    """
    K = np.asarray(K, np.float32)
    k = kernel_size
    Cin, Cout = K.shape[2], K.shape[3]
    out_size = get_out_size(in_size, padding, k, stride)
    xp_size = in_size + 2 * padding
    positions = np.arange(0, xp_size - k, stride)      # NOTE: stop is xp_size - k (reference quirk)
    n_pos = positions.size

    # Effective conv weight: pure data reinterpretation of K (k,k,Cin,Cout) as
    # (Cin,k,k,Cout) — this IS the weight/patch flatten-order mismatch.
    Wp = K.reshape(Cin, k, k, Cout)

    c, ki, kj, io, jo, co = (a.ravel() for a in np.meshgrid(
        np.arange(Cin), np.arange(k), np.arange(k),
        np.arange(n_pos), np.arange(n_pos), np.arange(Cout), indexing="ij"))
    ih = positions[io] + ki - padding
    iw = positions[jo] + kj - padding
    valid = (ih >= 0) & (ih < in_size) & (iw >= 0) & (iw < in_size)
    c, ki, kj, io, jo, co, ih, iw = (a[valid] for a in (c, ki, kj, io, jo, co, ih, iw))

    rows = c * in_size * in_size + ih * in_size + iw               # flat NCHW input index
    cols = co * out_size * out_size + io * out_size + jo           # flat NCHW output index
    M = np.zeros((Cin * in_size * in_size, Cout * out_size * out_size), np.float32)
    np.add.at(M, (rows, cols), Wp[c, ki, kj, co])

    filled = np.zeros((Cout, out_size, out_size), bool)
    filled[:, :n_pos, :n_pos] = True
    return M, out_size, filled.reshape(-1)


def _pad2d(a, rows, cols):
    return np.pad(a, ((0, rows - a.shape[0]), (0, cols - a.shape[1])))


def prepare_params(params):
    """One-time (numpy) lowering of module parameters into fused-kernel operands:
    conv->matrix lowering, zero-column compaction, conv3/fc fold, 128-alignment
    padding, lane-dense (128-wide) fc output with -1e30 pad bias, bf16 weights."""
    M1, o1, keep1 = _conv_layer_matrix(params["K1"], INPUT_SIZE, 5, 2, 1)
    M2, o2, keep2 = _conv_layer_matrix(params["K2"], o1, 3, 2, 1)
    M3, _, _ = _conv_layer_matrix(params["K3"], o2, 3, 2, 1)

    idx1 = np.nonzero(keep1)[0]          # layer-1 output: all 507 columns filled
    idx2 = np.nonzero(keep2)[0]          # layer-2 output: 216 of 294 columns filled

    M1c = M1[:, idx1]                    # (784, 507)
    M2c = M2[idx1][:, idx2]              # (507, 216)
    M3c = M3[idx2]                       # (216, 192); dropped rows were always-zero inputs

    fc_w_t = np.asarray(params["fc_w"], np.float32).T    # (192, 10)
    fc_b = np.asarray(params["fc_b"], np.float32)        # (10,)
    M3fc = M3c @ fc_w_t                  # fold conv3 into fc, composed in f32 -> (216, 10)

    d1 = _round_up(M1c.shape[1], 128)    # 507 -> 512
    d2 = _round_up(M2c.shape[1], 128)    # 216 -> 256
    dn = 128                             # fc output 10 -> 128 (lane-dense)

    b_pad = np.full((1, dn), -1e30, np.float32)          # large finite negative, not -inf
    b_pad[0, :fc_b.shape[0]] = fc_b

    return {
        "M1": jnp.asarray(_pad2d(M1c, M1c.shape[0], d1), jnp.bfloat16),   # (784, 512)
        "M2": jnp.asarray(_pad2d(M2c, d1, d2), jnp.bfloat16),             # (512, 256)
        "M3fc": jnp.asarray(_pad2d(M3fc, d2, dn), jnp.bfloat16),          # (256, 128)
        "fc_b": jnp.asarray(b_pad),                                       # (1, 128) f32
    }


def model_forward(x, prep, tb_max=256):
    """x: (B, 1, 28, 28) f32 -> (B, 10) softmax probabilities."""
    B = x.shape[0]
    x2 = x.reshape(B, -1).astype(jnp.bfloat16)     # NCHW flatten (C=1); bf16 MXU operand
    # Batch tile: multiple of 16 (bf16 sublane packing), capped at 256.  For big
    # batches this yields several "parallel" grid steps (keeps both v7x TCs busy).
    tb = min(tb_max, _round_up(B, 16))
    Bp = _round_up(B, tb)
    if Bp != B:
        x2 = jnp.pad(x2, ((0, Bp - B), (0, 0)))
    y = fused_forward(x2, prep["M1"], prep["M2"], prep["M3fc"], prep["fc_b"], tb)
    return y[:B, :10]


# ----------------------------- init & reference -----------------------------

def init_params(key):
    k1, k2, k3, k4, k5 = jax.random.split(key, 5)

    def kaiming_uniform(k, shape):
        # torch fan_in for a (k, k, Cin, Cout) tensor: dim1 * prod(dims[2:])
        fan_in = shape[1] * shape[2] * shape[3]
        bound = math.sqrt(2.0) * math.sqrt(3.0 / fan_in)
        return jax.random.uniform(k, shape, jnp.float32, -bound, bound)

    o_1 = get_out_size(INPUT_SIZE, kernel_size=5, stride=2, padding=1)
    o_2 = get_out_size(o_1, kernel_size=3, stride=2, padding=1)
    o_3 = get_out_size(o_2, kernel_size=3, stride=2, padding=1)
    fc_in = 12 * o_3 * o_3
    fc_bound = 1.0 / math.sqrt(fc_in)
    return {
        "K1": kaiming_uniform(k1, (5, 5, 1, 3)),
        "K2": kaiming_uniform(k2, (3, 3, 3, 6)),
        "K3": kaiming_uniform(k3, (3, 3, 6, 12)),
        "fc_w": jax.random.uniform(k4, (10, fc_in), jnp.float32, -fc_bound, fc_bound),
        "fc_b": jax.random.uniform(k5, (10,), jnp.float32, -fc_bound, fc_bound),
    }


def reference_forward(x, params):
    """Pure-JAX (f32) transcription of the PyTorch module (validation only)."""
    def conv(x, K, k, stride, padding):
        B, _, H, _ = x.shape
        Cout = K.shape[-1]
        out_size = get_out_size(H, padding, k, stride)
        xp = jnp.pad(x, ((0, 0), (0, 0), (padding, padding), (padding, padding)))
        P = H + 2 * padding
        Kf = K.reshape(-1, Cout)
        pos = list(range(0, P - k, stride))
        patches = [xp[:, :, i:i + k, j:j + k].reshape(B, -1) for i in pos for j in pos]
        out_part = jnp.stack(patches, axis=1) @ Kf                 # (B, n^2, Cout)
        n = len(pos)
        grid = out_part.reshape(B, n, n, Cout).transpose(0, 3, 1, 2)
        out = jnp.zeros((B, Cout, out_size, out_size), jnp.float32)
        return out.at[:, :, :n, :n].set(grid)

    h = jax.nn.relu(conv(x, params["K1"], 5, 2, 1))
    h = jax.nn.relu(conv(h, params["K2"], 3, 2, 1))
    h = conv(h, params["K3"], 3, 2, 1)
    logits = h.reshape(x.shape[0], -1) @ params["fc_w"].T + params["fc_b"][None, :]
    return jax.nn.softmax(logits, axis=-1)


if __name__ == "__main__":
    key = jax.random.PRNGKey(0)
    pkey, xkey = jax.random.split(key)
    params = init_params(pkey)
    prep = prepare_params(params)                 # one-time conv -> matmul lowering (numpy)

    # module hardwires 1 input channel and a 28x28 spatial size (fc depends on it)
    x = jax.random.normal(xkey, (2, 1, INPUT_SIZE, INPUT_SIZE), dtype=jnp.float32)

    y = jax.block_until_ready(jax.jit(model_forward)(x, prep))

    assert y.shape == (2, 10), y.shape
    assert bool(jnp.all(jnp.isfinite(y)))
    # rows of a softmax must sum to ~1 (approx reciprocal on the EUP)
    assert bool(jnp.allclose(jnp.sum(y, axis=1), 1.0, atol=2e-2))
    # match the pure-JAX f32 transcription of the PyTorch module
    # (loose tolerance: bf16 MXU operands with f32 accumulation)
    y_ref = jax.block_until_ready(jax.jit(reference_forward)(x, params))
    assert bool(jnp.allclose(y, y_ref, atol=3e-2, rtol=3e-2)), (y, y_ref)
    print("KERNEL_OK")
</pallas_src>

<mosaic_0001>
module attributes {stable_mosaic.version = 11 : i64} {
  func.func @_fused_forward_kernel(%arg0: i32, %arg1: memref<16x784xbf16, #tpu.memory_space<vmem>>, %arg2: memref<784x512xbf16, #tpu.memory_space<vmem>>, %arg3: memref<512x256xbf16, #tpu.memory_space<vmem>>, %arg4: memref<256x128xbf16, #tpu.memory_space<vmem>>, %arg5: memref<1x128xf32, #tpu.memory_space<vmem>>, %arg6: memref<16x128xf32, #tpu.memory_space<vmem>>) attributes {dimension_semantics = [#tpu.dimension_semantics<parallel>], iteration_bounds = array<i64: 1>, scalar_prefetch = 0 : i64, scratch_operands = 0 : i64, tpu.core_type = #tpu.core_type<tc>, window_params = [{transform_indices = @transform_0, window_bounds = array<i64: 16, 784>}, {pipeline_mode = #tpu.pipeline_mode<synchronous>, transform_indices = @transform_1, window_bounds = array<i64: 784, 512>}, {pipeline_mode = #tpu.pipeline_mode<synchronous>, transform_indices = @transform_2, window_bounds = array<i64: 512, 256>}, {pipeline_mode = #tpu.pipeline_mode<synchronous>, transform_indices = @transform_3, window_bounds = array<i64: 256, 128>}, {pipeline_mode = #tpu.pipeline_mode<synchronous>, transform_indices = @transform_4, window_bounds = array<i64: 1, 128>}, {transform_indices = @transform_5, window_bounds = array<i64: 16, 128>}]} {
    %c0 = arith.constant 0 : index
    %c0_0 = arith.constant 0 : index
    %0 = vector.load %arg1[%c0, %c0_0] : memref<16x784xbf16, #tpu.memory_space<vmem>>, vector<16x784xbf16>
    %c0_1 = arith.constant 0 : index
    %c0_2 = arith.constant 0 : index
    %1 = vector.load %arg2[%c0_1, %c0_2] : memref<784x512xbf16, #tpu.memory_space<vmem>>, vector<784x512xbf16>
    %cst = arith.constant dense<0.000000e+00> : vector<16x512xf32>
    %2 = tpu.matmul %0, %1, %cst {dimension_numbers = #tpu.dot_dimension_numbers<[1], [0], [0], [1], [0, 0, 1, 1], [], []>} : vector<16x784xbf16>, vector<784x512xbf16>, vector<16x512xf32> -> vector<16x512xf32>
    %cst_3 = arith.constant 0.000000e+00 : f32
    %3 = vector.broadcast %cst_3 : f32 to vector<16x512xf32>
    %4 = arith.maximumf %2, %3 : vector<16x512xf32>
    %5 = arith.truncf %4 : vector<16x512xf32> to vector<16x512xbf16>
    %c0_4 = arith.constant 0 : index
    %c0_5 = arith.constant 0 : index
    %6 = vector.load %arg3[%c0_4, %c0_5] : memref<512x256xbf16, #tpu.memory_space<vmem>>, vector<512x256xbf16>
    %cst_6 = arith.constant dense<0.000000e+00> : vector<16x256xf32>
    %7 = tpu.matmul %5, %6, %cst_6 {dimension_numbers = #tpu.dot_dimension_numbers<[1], [0], [0], [1], [0, 0, 1, 1], [], []>} : vector<16x512xbf16>, vector<512x256xbf16>, vector<16x256xf32> -> vector<16x256xf32>
    %cst_7 = arith.constant 0.000000e+00 : f32
    %8 = vector.broadcast %cst_7 : f32 to vector<16x256xf32>
    %9 = arith.maximumf %7, %8 : vector<16x256xf32>
    %10 = arith.truncf %9 : vector<16x256xf32> to vector<16x256xbf16>
    %c0_8 = arith.constant 0 : index
    %c0_9 = arith.constant 0 : index
    %11 = vector.load %arg4[%c0_8, %c0_9] : memref<256x128xbf16, #tpu.memory_space<vmem>>, vector<256x128xbf16>
    %cst_10 = arith.constant dense<0.000000e+00> : vector<16x128xf32>
    %12 = tpu.matmul %10, %11, %cst_10 {dimension_numbers = #tpu.dot_dimension_numbers<[1], [0], [0], [1], [0, 0, 1, 1], [], []>} : vector<16x256xbf16>, vector<256x128xbf16>, vector<16x128xf32> -> vector<16x128xf32>
    %c0_11 = arith.constant 0 : index
    %c0_12 = arith.constant 0 : index
    %13 = vector.load %arg5[%c0_11, %c0_12] : memref<1x128xf32, #tpu.memory_space<vmem>>, vector<1x128xf32>
    %14 = vector.broadcast %13 : vector<1x128xf32> to vector<16x128xf32>
    %15 = arith.addf %12, %14 : vector<16x128xf32>
    %cst_13 = arith.constant dense<0xFF800000> : vector<16xf32>
    %16 = vector.multi_reduction <maximumf>, %15, %cst_13 [1] : vector<16x128xf32> to vector<16xf32>
    %17 = vector.shape_cast %16 : vector<16xf32> to vector<16x1xf32>
    %18 = vector.broadcast %17 : vector<16x1xf32> to vector<16x128xf32>
    %19 = arith.subf %15, %18 : vector<16x128xf32>
    %20 = math.exp %19 : vector<16x128xf32>
    %cst_14 = arith.constant dense<0.000000e+00> : vector<16xf32>
    %21 = vector.multi_reduction <add>, %20, %cst_14 [1] : vector<16x128xf32> to vector<16xf32>
    %22 = vector.shape_cast %21 : vector<16xf32> to vector<16x1xf32>
    %23 = tpu.reciprocal %22 {approx = true} : vector<16x1xf32> -> vector<16x1xf32>
    %24 = vector.broadcast %23 : vector<16x1xf32> to vector<16x128xf32>
    %25 = arith.mulf %20, %24 : vector<16x128xf32>
    %c0_15 = arith.constant 0 : index
    %c0_16 = arith.constant 0 : index
    %26 = vector.load %arg6[%c0_15, %c0_16] : memref<16x128xf32, #tpu.memory_space<vmem>>, vector<16x128xf32>
    tpu.vector_store %arg6[%c0_15, %c0_16], %25 {strides = array<i32>} : memref<16x128xf32, #tpu.memory_space<vmem>>, vector<16x128xf32>,
    return
  }
  func.func @transform_0(%arg0: i32) -> (i32, i32) {
    %c0_i32 = arith.constant 0 : i32
    %c0_i32_0 = arith.constant 0 : i32
    return %arg0, %c0_i32 : i32, i32
  }
  func.func @transform_1(%arg0: i32) -> (i32, i32) {
    %c0_i32 = arith.constant 0 : i32
    %c0_i32_0 = arith.constant 0 : i32
    %c0_i32_1 = arith.constant 0 : i32
    return %c0_i32, %c0_i32_0 : i32, i32
  }
  func.func @transform_2(%arg0: i32) -> (i32, i32) {
    %c0_i32 = arith.constant 0 : i32
    %c0_i32_0 = arith.constant 0 : i32
    %c0_i32_1 = arith.constant 0 : i32
    return %c0_i32, %c0_i32_0 : i32, i32
  }
  func.func @transform_3(%arg0: i32) -> (i32, i32) {
    %c0_i32 = arith.constant 0 : i32
    %c0_i32_0 = arith.constant 0 : i32
    %c0_i32_1 = arith.constant 0 : i32
    return %c0_i32, %c0_i32_0 : i32, i32
  }
  func.func @transform_4(%arg0: i32) -> (i32, i32) {
    %c0_i32 = arith.constant 0 : i32
    %c0_i32_0 = arith.constant 0 : i32
    %c0_i32_1 = arith.constant 0 : i32
    return %c0_i32, %c0_i32_0 : i32, i32
  }
  func.func @transform_5(%arg0: i32) -> (i32, i32) {
    %c0_i32 = arith.constant 0 : i32
    %c0_i32_0 = arith.constant 0 : i32
    return %arg0, %c0_i32 : i32, i32
  }
}

</mosaic_0001>

<bundles_post_ra>
// kernel: model_forward.1
= control target key start
LH: loop header
LB: loop body
LE: loop exit
PB: predicated region body
PF: predicated region fallthrough
CT: control target
= control target key end

     0   :  { %10 = vsyncpa [#allocation3], 0  ;;  %s4045_s0 = inlined_call_operand.vmem [shape: bf16[16,784], index: 0, kind: input, shape index: {}]   ;;  %s4046_s1 = inlined_call_operand.hbm [shape: bf16[784,512], index: 1, kind: input, shape index: {}]   ;;  %s4047_s2 = inlined_call_operand.hbm [shape: bf16[512,256], index: 2, kind: input, shape index: {}]   ;;  %s4048_s3 = inlined_call_operand.vmem [shape: bf16[256,128], index: 3, kind: input, shape index: {}]   ;;  %s4049_s4 = inlined_call_operand.vmem [shape: f32[1,128], index: 4, kind: input, shape index: {}]   ;;  %s4050_s5 = inlined_call_operand.vmem [shape: f32[16,128], index: 5, kind: output, shape index: {}]  }
   0x1   :  { %s18_s20 = sshll.u32 %s4046_s1, 4  ;;  %s19_s20 = int_to_ptr.hbm [resolvable:$true] %s18_s20 }
   0x2   :  { %11 = vsyncpa [#allocation5], 0  ;;  %s3854_s21 = smov [#allocation2]   ;;  %s31_s25 = sshll.u32 %s4047_s2, 4  ;;  %s32_s25 = int_to_ptr.hbm [resolvable:$true] %s31_s25 }
   0x3   :  { %s20_s22 = sshll.u32 %s3854_s21, 4  ;;  %s3855_s26 = smov 256   ;;  %s21_s22 = int_to_ptr.vmem [resolvable:$true] %s20_s22 }
   0x4   :  { %s3856_s27 = smov 16   ;;  %s3857_s28 = smov [#allocation4]  }
   0x5   :  { %26 = dma.hbm_to_vmem [thread:$0]  %s19_s20, 25088, %s21_s22, [#allocation3], %s3855_s26, %s3855_s26, %s3856_s27  }
   0x6   :  { %s33_s29 = sshll.u32 %s3857_s28, 4  ;;  %s3858_s30 = smov 128   ;;  %s34_s29 = int_to_ptr.vmem [resolvable:$true] %s33_s29 }
   0x7   :  { %s3859_s6 = smov 8  }
   0x8   :  { %39 = dma.hbm_to_vmem [thread:$0]  %s32_s25, 8192, %s34_s29, [#allocation5], %s3858_s30, %s3858_s30, %s3859_s6  }
   0x9   :  { %3850 = dma.done.wait [#allocation3], 25088  }
   0xa   :  { %3851 = vsyncadd [#allocation3], 4294942208 }
   0xb   :  { %3852 = dma.done.wait [#allocation5], 8192  }
   0xc   :  { %3853 = vsyncadd [#allocation5], 4294959104  ;;  %v2510_v0 = vld [vmem:[#allocation2 + $0xe0] sm:$0xf]  ;;  %v3541_v1 = vld [vmem:[#allocation2 + $0xec] sm:$0xf0] }
   0xd   :  { %v2638_v2 = vld [vmem:[#allocation2 + $0x1e0] sm:$0xf]  ;;  %v2511_v3 = vor.u32 %v3541_v1, %v2510_v0  ;;  %v3573_v4 = vld [vmem:[#allocation2 + $0x1ec] sm:$0xf0]  ;;  %vm1272_vm0 = vcmask 130048  }
   0xe   :  { %v2766_v5 = vld [vmem:[#allocation2 + $0x2e0] sm:$0xf]  ;;  %v3605_v6 = vld [vmem:[#allocation2 + $0x2ec] sm:$0xf0]  ;;  %v2639_v7 = vor.u32 %v3573_v4, %v2638_v2 }
   0xf   :  { %v2767_v8 = vor.u32 %v3605_v6, %v2766_v5  ;;  %v2894_v9 = vld [vmem:[#allocation2 + $0x3e0] sm:$0xf]  ;;  %v3637_v10 = vld [vmem:[#allocation2 + $0x3ec] sm:$0xf0]  ;;  %1276 = vmatpush.bf16.msra.mxu0 %v2511_v3 }
  0x10   :  { %v2494_v11 = vld [vmem:[#allocation2 + $0xc0] sm:$0xf]  ;;  %v2895_v12 = vor.u32 %v3637_v10, %v2894_v9  ;;  %v3537_v13 = vld [vmem:[#allocation2 + $0xcc] sm:$0xf0]  ;;  %1290 = vmatpush.bf16.msra.mxu1 %v2639_v7 }
  0x11   :  { %v2622_v14 = vld [vmem:[#allocation2 + $0x1c0] sm:$0xf]  ;;  %v3569_v15 = vld [vmem:[#allocation2 + $0x1cc] sm:$0xf0]  ;;  %1304 = vmatpush.bf16.msra.mxu2 %v2767_v8  ;;  %v2495_v16 = vor.u32 %v3537_v13, %v2494_v11 }
  0x12   :  { %v2623_v17 = vor.u32 %v3569_v15, %v2622_v14  ;;  %v2750_v18 = vld [vmem:[#allocation2 + $0x2c0] sm:$0xf]  ;;  %v3601_v19 = vld [vmem:[#allocation2 + $0x2cc] sm:$0xf0]  ;;  %1318 = vmatpush.bf16.msra.mxu3 %v2895_v12 }
  0x13   :  { %v2878_v20 = vld [vmem:[#allocation2 + $0x3c0] sm:$0xf]  ;;  %v2751_v21 = vor.u32 %v3601_v19, %v2750_v18  ;;  %v3633_v22 = vld [vmem:[#allocation2 + $0x3cc] sm:$0xf0]  ;;  %1277 = vmatpush.bf16.msra.mxu0 %v2495_v16 }
  0x14   :  { %v2478_v23 = vld [vmem:[#allocation2 + $0xa0] sm:$0xf]  ;;  %v3533_v24 = vld [vmem:[#allocation2 + $0xac] sm:$0xf0]  ;;  %v2879_v25 = vor.u32 %v3633_v22, %v2878_v20  ;;  %1291 = vmatpush.bf16.msra.mxu1 %v2623_v17 }
  0x15   :  { %v2606_v26 = vld [vmem:[#allocation2 + $0x1a0] sm:$0xf]  ;;  %v3565_v27 = vld [vmem:[#allocation2 + $0x1ac] sm:$0xf0]  ;;  %v2479_v29 = vor.u32 %v3533_v24, %v2478_v23  ;;  %1305 = vmatpush.bf16.msra.mxu2 %v2751_v21 }
  0x16   :  { %v2734_v28 = vld [vmem:[#allocation2 + $0x2a0] sm:$0xf]  ;;  %v3597_v30 = vld [vmem:[#allocation2 + $0x2ac] sm:$0xf0]  ;;  %v2607_v33 = vor.u32 %v3565_v27, %v2606_v26  ;;  %1319 = vmatpush.bf16.msra.mxu3 %v2879_v25 }
  0x17   :  { %v2862_v31 = vld [vmem:[#allocation2 + $0x3a0] sm:$0xf]  ;;  %v3629_v32 = vld [vmem:[#allocation2 + $0x3ac] sm:$0xf0]  ;;  %v2735_v34 = vor.u32 %v3597_v30, %v2734_v28  ;;  %1278 = vmatpush.bf16.msra.mxu0 %v2479_v29 }
  0x18   :  { %v2462_v35 = vld [vmem:[#allocation2 + $0x80] sm:$0xf]  ;;  %v3529_v36 = vld [vmem:[#allocation2 + $0x8c] sm:$0xf0]  ;;  %v2863_v38 = vor.u32 %v3629_v32, %v2862_v31  ;;  %1292 = vmatpush.bf16.msra.mxu1 %v2607_v33  ;;  %v3539_v32 = vld [vmem:[#allocation2 + $0xe4] sm:$0xf] }
  0x19   :  { %v2590_v37 = vld [vmem:[#allocation2 + $0x180] sm:$0xf]  ;;  %v3561_v39 = vld [vmem:[#allocation2 + $0x18c] sm:$0xf0]  ;;  %v2463_v44 = vor.u32 %v3529_v36, %v2462_v35  ;;  %1306 = vmatpush.bf16.msra.mxu2 %v2735_v34  ;;  %v2512_v33 = vld [vmem:[#allocation2 + $0xf0] sm:$0xf0] }
  0x1a   :  { %v2718_v40 = vld [vmem:[#allocation2 + $0x280] sm:$0xf]  ;;  %v3593_v41 = vld [vmem:[#allocation2 + $0x28c] sm:$0xf0]  ;;  %v2591_v45 = vor.u32 %v3561_v39, %v2590_v37  ;;  %1320 = vmatpush.bf16.msra.mxu3 %v2863_v38  ;;  %v2378_v34 = vld [vmem:[%s4045_s0 + $0x8] sm:$0xf] }
  0x1b   :  { %v2846_v42 = vld [vmem:[#allocation2 + $0x380] sm:$0xf]  ;;  %v3625_v43 = vld [vmem:[#allocation2 + $0x38c] sm:$0xf0]  ;;  %v2719_v46 = vor.u32 %v3593_v41, %v2718_v40  ;;  %1279 = vmatpush.bf16.msra.mxu0 %v2463_v44  ;;  %v3508_v36 = vld [vmem:[%s4045_s0 + $0x20] sm:$0xf0] }
  0x1c   :  { %v2446_v47 = vld [vmem:[#allocation2 + $0x60] sm:$0xf]  ;;  %v3525_v48 = vld [vmem:[#allocation2 + $0x6c] sm:$0xf0]  ;;  %v2847_v50 = vor.u32 %v3625_v43, %v2846_v42  ;;  %1293 = vmatpush.bf16.msra.mxu1 %v2591_v45  ;;  %v3571_v41 = vld [vmem:[#allocation2 + $0x1e4] sm:$0xf] }
  0x1d   :  { %v2574_v49 = vld [vmem:[#allocation2 + $0x160] sm:$0xf]  ;;  %v3557_v51 = vld [vmem:[#allocation2 + $0x16c] sm:$0xf0]  ;;  %v2447_v56 = vor.u32 %v3525_v48, %v2446_v47  ;;  %1307 = vmatpush.bf16.msra.mxu2 %v2719_v46  ;;  %v3507_v43 = vld [vmem:[%s4045_s0 + $0x18] sm:$0xf0] }
  0x1e   :  { %v2702_v52 = vld [vmem:[#allocation2 + $0x260] sm:$0xf]  ;;  %v3589_v53 = vld [vmem:[#allocation2 + $0x26c] sm:$0xf0]  ;;  %v2575_v57 = vor.u32 %v3557_v51, %v2574_v49  ;;  %1321 = vmatpush.bf16.msra.mxu3 %v2847_v50  ;;  %v2640_v46 = vld [vmem:[#allocation2 + $0x1f0] sm:$0xf0]  ;;  %v2515_v50 = vor.u32 %v3539_v32, %v2512_v33 }
  0x1f   :  { %v2830_v54 = vld [vmem:[#allocation2 + $0x360] sm:$0xf]  ;;  %v3621_v55 = vld [vmem:[#allocation2 + $0x36c] sm:$0xf0]  ;;  %v2703_v58 = vor.u32 %v3589_v53, %v2702_v52  ;;  %1280 = vmatpush.bf16.msra.mxu0 %v2447_v56  ;;  %v3505_v47 = vld [vmem:[%s4045_s0 + $0xc] sm:$0xf] }
  0x20   :  { %v2430_v59 = vld [vmem:[#allocation2 + $0x40] sm:$0xf]  ;;  %v3521_v60 = vld [vmem:[#allocation2 + $0x4c] sm:$0xf0]  ;;  %v2831_v62 = vor.u32 %v3621_v55, %v2830_v54  ;;  %1294 = vmatpush.bf16.msra.mxu1 %v2575_v57  ;;  %v2380_v48 = vld [vmem:[%s4045_s0 + $0x24] sm:$0xf0]  ;;  %v3914_v54 = vor.u32 %v3508_v36, %v2378_v34 }
  0x21   :  { %v2558_v61 = vld [vmem:[#allocation2 + $0x140] sm:$0xf]  ;;  %v3553_v63 = vld [vmem:[#allocation2 + $0x14c] sm:$0xf0]  ;;  %v2431_v4 = vor.u32 %v3521_v60, %v2430_v59  ;;  %1308 = vmatpush.bf16.msra.mxu2 %v2703_v58  ;;  %v3535_v56 = vld [vmem:[#allocation2 + $0xc4] sm:$0xf]  ;;  %v3918_v60 = vor.u32 %v3505_v47, %v2380_v48 }
  0x22   :  { %v2686_v0 = vld [vmem:[#allocation2 + $0x240] sm:$0xf]  ;;  %v3585_v1 = vld [vmem:[#allocation2 + $0x24c] sm:$0xf0]  ;;  %v2559_v6 = vor.u32 %v3553_v63, %v2558_v61  ;;  %1322 = vmatpush.bf16.msra.mxu3 %v2831_v62  ;;  %v2496_v57 = vld [vmem:[#allocation2 + $0xd0] sm:$0xf0]  ;;  %v2643_v63 = vor.u32 %v3571_v41, %v2640_v46 }
  0x23   :  { %v2814_v2 = vld [vmem:[#allocation2 + $0x340] sm:$0xf]  ;;  %v3617_v3 = vld [vmem:[#allocation2 + $0x34c] sm:$0xf0]  ;;  %v2687_v7 = vor.u32 %v3585_v1, %v2686_v0  ;;  %1281 = vmatpush.bf16.msra.mxu0 %v2431_v4  ;;  %v3504_v61 = vld [vmem:[%s4045_s0 + $0x4] sm:$0xf]  ;;  %v2499_v4 = vor.u32 %v3535_v56, %v2496_v57 }
  0x24   :  { %v2414_v5 = vld [vmem:[#allocation2 + $0x20] sm:$0xf]  ;;  %v3517_v8 = vld [vmem:[#allocation2 + $0x2c] sm:$0xf0]  ;;  %v2815_v11 = vor.u32 %v3617_v3, %v2814_v2  ;;  %1295 = vmatpush.bf16.msra.mxu1 %v2559_v6  ;;  %v3567_v1 = vld [vmem:[#allocation2 + $0x1c4] sm:$0xf] }
  0x25   :  { %v2542_v9 = vld [vmem:[#allocation2 + $0x120] sm:$0xf]  ;;  %v3549_v10 = vld [vmem:[#allocation2 + $0x12c] sm:$0xf0]  ;;  %v2415_v18 = vor.u32 %v3517_v8, %v2414_v5  ;;  %1309 = vmatpush.bf16.msra.mxu2 %v2687_v7  ;;  %v2624_v2 = vld [vmem:[#allocation2 + $0x1d0] sm:$0xf0] }
  0x26   :  { %v2670_v12 = vld [vmem:[#allocation2 + $0x220] sm:$0xf]  ;;  %v3581_v13 = vld [vmem:[#allocation2 + $0x22c] sm:$0xf0]  ;;  %v2543_v23 = vor.u32 %v3549_v10, %v2542_v9  ;;  %1323 = vmatpush.bf16.msra.mxu3 %v2815_v11  ;;  %v3531_v10 = vld [vmem:[#allocation2 + $0xa4] sm:$0xf] }
  0x27   :  { %v2798_v14 = vld [vmem:[#allocation2 + $0x320] sm:$0xf]  ;;  %v3613_v15 = vld [vmem:[#allocation2 + $0x32c] sm:$0xf0]  ;;  %v2671_v24 = vor.u32 %v3581_v13, %v2670_v12  ;;  %1282 = vmatpush.bf16.msra.mxu0 %v2415_v18  ;;  %v2480_v11 = vld [vmem:[#allocation2 + $0xb0] sm:$0xf0]  ;;  %v2627_v12 = vor.u32 %v3567_v1, %v2624_v2 }
  0x28   :  { %v2398_v16 = vld [vmem:[#allocation2] sm:$0xf]  ;;  %v3513_v17 = vld [vmem:[#allocation2 + $0xc] sm:$0xf0]  ;;  %v2799_v28 = vor.u32 %v3613_v15, %v2798_v14  ;;  %1296 = vmatpush.bf16.msra.mxu1 %v2543_v23  ;;  %v3563_v14 = vld [vmem:[#allocation2 + $0x1a4] sm:$0xf] }
  0x29   :  { %v2526_v19 = vld [vmem:[#allocation2 + $0x100] sm:$0xf]  ;;  %v3545_v20 = vld [vmem:[#allocation2 + $0x10c] sm:$0xf0]  ;;  %v2399_v35 = vor.u32 %v3513_v17, %v2398_v16  ;;  %1310 = vmatpush.bf16.msra.mxu2 %v2671_v24  ;;  %v2608_v15 = vld [vmem:[#allocation2 + $0x1b0] sm:$0xf0]  ;;  %v2483_v17 = vor.u32 %v3531_v10, %v2480_v11 }
  0x2a   :  { %v2654_v21 = vld [vmem:[#allocation2 + $0x200] sm:$0xf]  ;;  %v3577_v22 = vld [vmem:[#allocation2 + $0x20c] sm:$0xf0]  ;;  %v2527_v39 = vor.u32 %v3545_v20, %v2526_v19  ;;  %1324 = vmatpush.bf16.msra.mxu3 %v2799_v28  ;;  %v2464_v23 = vld [vmem:[#allocation2 + $0x90] sm:$0xf0]  ;;  %v2611_v24 = vor.u32 %v3563_v14, %v2608_v15 }
  0x2b   :  { %v2782_v25 = vld [vmem:[#allocation2 + $0x300] sm:$0xf]  ;;  %v3609_v26 = vld [vmem:[#allocation2 + $0x30c] sm:$0xf0]  ;;  %v2655_v40 = vor.u32 %v3577_v22, %v2654_v21  ;;  %1283 = vmatpush.bf16.msra.mxu0 %v2399_v35  ;;  %v3527_v22 = vld [vmem:[#allocation2 + $0x84] sm:$0xf] }
  0x2c   :  { %v3022_v27 = vld [vmem:[#allocation2 + $0x4e0] sm:$0xf]  ;;  %v3669_v29 = vld [vmem:[#allocation2 + $0x4ec] sm:$0xf0]  ;;  %v2783_v44 = vor.u32 %v3609_v26, %v2782_v25  ;;  %1297 = vmatpush.bf16.msra.mxu1 %v2527_v39  ;;  %v3559_v26 = vld [vmem:[#allocation2 + $0x184] sm:$0xf] }
  0x2d   :  { %v3150_v30 = vld [vmem:[#allocation2 + $0x5e0] sm:$0xf]  ;;  %v3701_v31 = vld [vmem:[#allocation2 + $0x5ec] sm:$0xf0]  ;;  %v3023_v45 = vor.u32 %v3669_v29, %v3022_v27  ;;  %1311 = vmatpush.bf16.msra.mxu2 %v2655_v40  ;;  %v2592_v27 = vld [vmem:[#allocation2 + $0x190] sm:$0xf0]  ;;  %v2467_v29 = vor.u32 %v3527_v22, %v2464_v23 }
  0x2e   :  { %v3166_v37 = vld [vmem:[#allocation2 + $0x600] sm:$0xf]  ;;  %v3705_v38 = vld [vmem:[#allocation2 + $0x60c] sm:$0xf0]  ;;  %v3151_v49 = vor.u32 %v3701_v31, %v3150_v30  ;;  %1325 = vmatpush.bf16.msra.mxu3 %v2783_v44  ;;  %v3523_v34 = vld [vmem:[#allocation2 + $0x64] sm:$0xf] }
  0x2f   :  { %v2370_v42 = vld [vmem:[%s4045_s0] sm:$0xf]  ;;  %v3665_v52 = vld [vmem:[#allocation2 + $0x4cc] sm:$0xf0]  ;;  %v3167_v59 = vor.u32 %v3705_v38, %v3166_v37  ;;  %1332 = vmatpush.bf16.msrb.mxu0 %v3023_v45  ;;  %v2448_v35 = vld [vmem:[#allocation2 + $0x70] sm:$0xf0]  ;;  %v2595_v38 = vor.u32 %v3559_v26, %v2592_v27 }
  0x30   :  { %v3006_v51 = vld [vmem:[#allocation2 + $0x4c0] sm:$0xf]  ;;  %v3697_v55 = vld [vmem:[#allocation2 + $0x5cc] sm:$0xf0]  ;;  %v3916_v58 = vor.u32 %v3507_v43, %v2370_v42  ;;  %1346 = vmatpush.bf16.msrb.mxu1 %v3151_v49  ;;  %1312 = vmatmul.bf16.vlgmr.msra.gmra.mxu2 %v3914_v54  ;;  %v2394_v36 = vld [vmem:[%s4045_s0 + $0x18] sm:$0xf]  ;;  %v2451_v43 = vor.u32 %v3523_v34, %v2448_v35 }
  0x31   :  { %v3134_v53 = vld [vmem:[#allocation2 + $0x5c0] sm:$0xf]  ;;  %v3007_v0 = vor.u32 %v3665_v52, %v3006_v51  ;;  %v3661_v6 = vld [vmem:[#allocation2 + $0x4ac] sm:$0xf0]  ;;  %1367 = vmatpush.bf16.msrb.mxu2 %v3167_v59  ;;  %1326 = vmatmul.bf16.vlgmr.msra.gmra.mxu3 %v3918_v60  ;;  %v3510_v37 = vld [vmem:[%s4045_s0 + $0x30] sm:$0xf0] }
  0x32   :  { %v2372_v62 = vld [vmem:[%s4045_s0 + $0x1c] sm:$0xf0]  ;;  %1374 = vmatpush.bf16.msrb.mxu3 %v2515_v50  ;;  %v3135_v3 = vor.u32 %v3697_v55, %v3134_v53  ;;  %1284 = vmatmul.bf16.vlgmr.msra.gmra.mxu0 %v3916_v58  ;;  %v3693_v9 = vld [vmem:[#allocation2 + $0x5ac] sm:$0xf0]  ;;  %v3555_v40 = vld [vmem:[#allocation2 + $0x164] sm:$0xf]  ;;  %v3938_v50 = vor.u32 %v3510_v37, %v2394_v36 }
  0x33   :  { %v2990_v5 = vld [vmem:[#allocation2 + $0x4a0] sm:$0xf]  ;;  %v3928_v8 = vor.u32 %v3504_v61, %v2372_v62  ;;  %1333 = vmatpush.bf16.msrb.mxu0 %v3007_v0  ;;  %v3657_v19 = vld [vmem:[#allocation2 + $0x48c] sm:$0xf0]  ;;  %v2576_v41 = vld [vmem:[#allocation2 + $0x170] sm:$0xf0] }
  0x34   :  { %v3118_v7 = vld [vmem:[#allocation2 + $0x5a0] sm:$0xf]  ;;  %v2991_v13 = vor.u32 %v3661_v6, %v2990_v5  ;;  %1347 = vmatpush.bf16.msrb.mxu1 %v3135_v3  ;;  %v3689_v21 = vld [vmem:[#allocation2 + $0x58c] sm:$0xf0]  ;;  %v3519_v48 = vld [vmem:[#allocation2 + $0x44] sm:$0xf]  ;;  %v2579_v51 = vor.u32 %v3555_v40, %v2576_v41 }
  0x35   :  { %1388 = vmatpush.bf16.msra.mxu2 %v2643_v63  ;;  %v3119_v16 = vor.u32 %v3693_v9, %v3118_v7  ;;  %v2974_v18 = vld [vmem:[#allocation2 + $0x480] sm:$0xf]  ;;  %1298 = vmatmul.bf16.vlgmr.msra.gmra.mxu1 %v3928_v8  ;;  %v3653_v31 = vld [vmem:[#allocation2 + $0x46c] sm:$0xf0]  ;;  %v2432_v49 = vld [vmem:[#allocation2 + $0x50] sm:$0xf0] }
  0x36   :  { %1375 = vmatpush.bf16.msrb.mxu3 %v2499_v4  ;;  %v3102_v20 = vld [vmem:[#allocation2 + $0x580] sm:$0xf]  ;;  %v2975_v25 = vor.u32 %v3657_v19, %v2974_v18  ;;  %v3685_v33 = vld [vmem:[#allocation2 + $0x56c] sm:$0xf0]  ;;  %v3551_v53 = vld [vmem:[#allocation2 + $0x144] sm:$0xf]  ;;  %v2435_v57 = vor.u32 %v3519_v48, %v2432_v49 }
  0x37   :  { %1334 = vmatpush.bf16.msrb.mxu0 %v2991_v13  ;;  %v3103_v28 = vor.u32 %v3689_v21, %v3102_v20  ;;  %v2958_v30 = vld [vmem:[#allocation2 + $0x460] sm:$0xf]  ;;  %v3649_v45 = vld [vmem:[#allocation2 + $0x44c] sm:$0xf0]  ;;  %v2560_v55 = vld [vmem:[#allocation2 + $0x150] sm:$0xf0] }
  0x38   :  { %1348 = vmatpush.bf16.msrb.mxu1 %v3119_v16  ;;  %v3086_v32 = vld [vmem:[#allocation2 + $0x560] sm:$0xf]  ;;  %v2959_v39 = vor.u32 %v3653_v31, %v2958_v30  ;;  %v3681_v47 = vld [vmem:[#allocation2 + $0x54c] sm:$0xf0]  ;;  %v3515_v0 = vld [vmem:[#allocation2 + $0x24] sm:$0xf]  ;;  %v2563_v4 = vor.u32 %v3551_v53, %v2560_v55 }
  0x39   :  { %1389 = vmatpush.bf16.msra.mxu2 %v2627_v12  ;;  %v3087_v42 = vor.u32 %v3685_v33, %v3086_v32  ;;  %v2942_v44 = vld [vmem:[#allocation2 + $0x440] sm:$0xf]  ;;  %v3645_v61 = vld [vmem:[#allocation2 + $0x42c] sm:$0xf0]  ;;  %v2416_v1 = vld [vmem:[#allocation2 + $0x30] sm:$0xf0] }
  0x3a   :  { %1376 = vmatpush.bf16.msrb.mxu3 %v2483_v17  ;;  %v3070_v46 = vld [vmem:[#allocation2 + $0x540] sm:$0xf]  ;;  %v2943_v52 = vor.u32 %v3649_v45, %v2942_v44  ;;  %v3677_v63 = vld [vmem:[#allocation2 + $0x52c] sm:$0xf0]  ;;  %v3547_v2 = vld [vmem:[#allocation2 + $0x124] sm:$0xf]  ;;  %v2419_v11 = vor.u32 %v3515_v0, %v2416_v1 }
  0x3b   :  { %1335 = vmatpush.bf16.msrb.mxu0 %v2975_v25  ;;  %v3071_v56 = vor.u32 %v3681_v47, %v3070_v46  ;;  %v2926_v59 = vld [vmem:[#allocation2 + $0x420] sm:$0xf]  ;;  %v2544_v3 = vld [vmem:[#allocation2 + $0x130] sm:$0xf0]  ;;  %v3641_v7 = vld [vmem:[#allocation2 + $0x40c] sm:$0xf0] }
  0x3c   :  { %1349 = vmatpush.bf16.msrb.mxu1 %v3103_v28  ;;  %v3054_v62 = vld [vmem:[#allocation2 + $0x520] sm:$0xf]  ;;  %v2927_v5 = vor.u32 %v3645_v61, %v2926_v59  ;;  %v3673_v12 = vld [vmem:[#allocation2 + $0x50c] sm:$0xf0]  ;;  %v3511_v13 = vld [vmem:[#allocation2 + $0x4] sm:$0xf]  ;;  %v2547_v21 = vor.u32 %v3547_v2, %v2544_v3 }
  0x3d   :  { %1390 = vmatpush.bf16.msra.mxu2 %v2611_v24  ;;  %v2910_v6 = vld [vmem:[#allocation2 + $0x400] sm:$0xf]  ;;  %v3055_v10 = vor.u32 %v3677_v63, %v3054_v62  ;;  %v2400_v14 = vld [vmem:[#allocation2 + $0x10] sm:$0xf0]  ;;  %v3603_v15 = vld [vmem:[#allocation2 + $0x2e4] sm:$0xf] }
  0x3e   :  { %1377 = vmatpush.bf16.msrb.mxu3 %v2467_v29  ;;  %v3038_v9 = vld [vmem:[#allocation2 + $0x500] sm:$0xf]  ;;  %v2768_v16 = vld [vmem:[#allocation2 + $0x2f0] sm:$0xf0]  ;;  %v3635_v17 = vld [vmem:[#allocation2 + $0x3e4] sm:$0xf]  ;;  %v2911_v22 = vor.u32 %v3641_v7, %v2910_v6  ;;  %v2403_v27 = vor.u32 %v3511_v13, %v2400_v14 }
  0x3f   :  { %1336 = vmatpush.bf16.msrb.mxu0 %v2959_v39  ;;  %v2896_v18 = vld [vmem:[#allocation2 + $0x3f0] sm:$0xf0]  ;;  %v3667_v19 = vld [vmem:[#allocation2 + $0x4e4] sm:$0xf]  ;;  %v2386_v23 = vld [vmem:[%s4045_s0 + $0x10] sm:$0xf]  ;;  %v3039_v26 = vor.u32 %v3673_v12, %v3038_v9  ;;  %v2771_v31 = vor.u32 %v3603_v15, %v2768_v16 }
  0x40   :  { %1350 = vmatpush.bf16.msrb.mxu1 %v3087_v42  ;;  %3180 = vmatmul.msk.bf16.vlgmr.msrb.gmra.mxu2 %vm1272_vm0, %v3938_v50  ;;  %v3024_v20 = vld [vmem:[#allocation2 + $0x4f0] sm:$0xf0]  ;;  %v3509_v24 = vld [vmem:[%s4045_s0 + $0x28] sm:$0xf0]  ;;  %v3543_v25 = vld [vmem:[#allocation2 + $0x104] sm:$0xf]  ;;  %v2899_v32 = vor.u32 %v3635_v17, %v2896_v18 }
  0x41   :  { %1391 = vmatpush.bf16.msra.mxu2 %v2595_v38  ;;  %v2528_v28 = vld [vmem:[#allocation2 + $0x110] sm:$0xf0]  ;;  %v2388_v30 = vld [vmem:[%s4045_s0 + $0x2c] sm:$0xf0]  ;;  %v3699_v33 = vld [vmem:[#allocation2 + $0x5e4] sm:$0xf]  ;;  %v3027_v36 = vor.u32 %v3667_v19, %v3024_v20  ;;  %v3954_v37 = vor.u32 %v3509_v24, %v2386_v23 }
  0x42   :  { %1378 = vmatpush.bf16.msrb.mxu3 %v2451_v43  ;;  %v3506_v29 = vld [vmem:[%s4045_s0 + $0x14] sm:$0xf]  ;;  %v3599_v35 = vld [vmem:[#allocation2 + $0x2c4] sm:$0xf]  ;;  %v2531_v41 = vor.u32 %v3543_v25, %v2528_v28 }
  0x43   :  { %1337 = vmatpush.bf16.msrb.mxu0 %v2943_v52  ;;  %v3152_v34 = vld [vmem:[#allocation2 + $0x5f0] sm:$0xf0]  ;;  %v3631_v39 = vld [vmem:[#allocation2 + $0x3c4] sm:$0xf]  ;;  %v3956_v42 = vor.u32 %v3506_v29, %v2388_v30 }
  0x44   :  { %1351 = vmatpush.bf16.msrb.mxu1 %v3071_v56  ;;  %v2752_v38 = vld [vmem:[#allocation2 + $0x2d0] sm:$0xf0]  ;;  %v3663_v43 = vld [vmem:[#allocation2 + $0x4c4] sm:$0xf]  ;;  %v3155_v45 = vor.u32 %v3699_v33, %v3152_v34 }
  0x45   :  { %1392 = vmatpush.bf16.msra.mxu2 %v2579_v51  ;;  %v2880_v40 = vld [vmem:[#allocation2 + $0x3d0] sm:$0xf0]  ;;  %v2755_v46 = vor.u32 %v3599_v35, %v2752_v38  ;;  %v3695_v48 = vld [vmem:[#allocation2 + $0x5c4] sm:$0xf] }
  0x46   :  { %1379 = vmatpush.bf16.msrb.mxu3 %v2435_v57  ;;  %v3008_v44 = vld [vmem:[#allocation2 + $0x4d0] sm:$0xf0]  ;;  %v2883_v47 = vor.u32 %v3631_v39, %v2880_v40  ;;  %v3595_v51 = vld [vmem:[#allocation2 + $0x2a4] sm:$0xf] }
  0x47   :  { %1338 = vmatpush.bf16.msrb.mxu0 %v2927_v5  ;;  %v3136_v49 = vld [vmem:[#allocation2 + $0x5d0] sm:$0xf0]  ;;  %v3011_v52 = vor.u32 %v3663_v43, %v3008_v44  ;;  %v3627_v55 = vld [vmem:[#allocation2 + $0x3a4] sm:$0xf] }
  0x48   :  { %1352 = vmatpush.bf16.msrb.mxu1 %v3055_v10  ;;  %v2736_v53 = vld [vmem:[#allocation2 + $0x2b0] sm:$0xf0]  ;;  %v3659_v57 = vld [vmem:[#allocation2 + $0x4a4] sm:$0xf]  ;;  %v3139_v61 = vor.u32 %v3695_v48, %v3136_v49 }
  0x49   :  { %1393 = vmatpush.bf16.msra.mxu2 %v2563_v4  ;;  %v2864_v56 = vld [vmem:[#allocation2 + $0x3b0] sm:$0xf0]  ;;  %v2739_v62 = vor.u32 %v3595_v51, %v2736_v53  ;;  %v3691_v0 = vld [vmem:[#allocation2 + $0x5a4] sm:$0xf] }
  0x4a   :  { %1380 = vmatpush.bf16.msrb.mxu3 %v2419_v11  ;;  %v2992_v59 = vld [vmem:[#allocation2 + $0x4b0] sm:$0xf0]  ;;  %v2867_v63 = vor.u32 %v3627_v55, %v2864_v56  ;;  %v3591_v2 = vld [vmem:[#allocation2 + $0x284] sm:$0xf] }
  0x4b   :  { %1339 = vmatpush.bf16.msrb.mxu0 %v2911_v22  ;;  %v3120_v1 = vld [vmem:[#allocation2 + $0x5b0] sm:$0xf0]  ;;  %v2995_v3 = vor.u32 %v3659_v57, %v2992_v59  ;;  %v3623_v5 = vld [vmem:[#allocation2 + $0x384] sm:$0xf] }
  0x4c   :  { %1353 = vmatpush.bf16.msrb.mxu1 %v3039_v26  ;;  %v2720_v4 = vld [vmem:[#allocation2 + $0x290] sm:$0xf0]  ;;  %v3655_v7 = vld [vmem:[#allocation2 + $0x484] sm:$0xf]  ;;  %v3123_v10 = vor.u32 %v3691_v0, %v3120_v1  ;;  %v2518_v0 = vld [vmem:[#allocation2 + $0xe8] sm:$0xf] }
  0x4d   :  { %1394 = vmatpush.bf16.msra.mxu2 %v2547_v21  ;;  %v2848_v6 = vld [vmem:[#allocation2 + $0x390] sm:$0xf0]  ;;  %v2723_v11 = vor.u32 %v3591_v2, %v2720_v4  ;;  %v3687_v13 = vld [vmem:[#allocation2 + $0x584] sm:$0xf]  ;;  %v3542_v1 = vld [vmem:[#allocation2 + $0xf4] sm:$0xf0] }
  0x4e   :  { %1381 = vmatpush.bf16.msrb.mxu3 %v2403_v27  ;;  %1340 = vmatmul.bf16.vlgmr.msrb.gmra.mxu0 %v3954_v37  ;;  %v2976_v9 = vld [vmem:[#allocation2 + $0x490] sm:$0xf0]  ;;  %v2851_v12 = vor.u32 %v3623_v5, %v2848_v6  ;;  %v3587_v15 = vld [vmem:[#allocation2 + $0x264] sm:$0xf]  ;;  %v2646_v2 = vld [vmem:[#allocation2 + $0x1e8] sm:$0xf] }
  0x4f   :  { %1402 = vmatpush.bf16.msra.mxu0 %v2771_v31  ;;  %1354 = vmatmul.bf16.vlgmr.msrb.gmra.mxu1 %v3956_v42  ;;  %v3104_v14 = vld [vmem:[#allocation2 + $0x590] sm:$0xf0]  ;;  %v2979_v16 = vor.u32 %v3655_v7, %v2976_v9  ;;  %v3619_v18 = vld [vmem:[#allocation2 + $0x364] sm:$0xf]  ;;  %v3574_v4 = vld [vmem:[#allocation2 + $0x1f4] sm:$0xf0] }
  0x50   :  { %1416 = vmatpush.bf16.msra.mxu1 %v2899_v32  ;;  %v2704_v17 = vld [vmem:[#allocation2 + $0x270] sm:$0xf0]  ;;  %v3651_v20 = vld [vmem:[#allocation2 + $0x464] sm:$0xf]  ;;  %v3107_v22 = vor.u32 %v3687_v13, %v3104_v14  ;;  %v2519_v13 = vor.u32 %v3542_v1, %v2518_v0  ;;  %v2902_v14 = vld [vmem:[#allocation2 + $0x3e8] sm:$0xf] }
  0x51   :  { %1395 = vmatpush.bf16.msra.mxu2 %v2531_v41  ;;  %1382 = vmatmul.bf16.vlgmr.msrb.gmra.mxu3 %v3916_v58  ;;  %v2832_v19 = vld [vmem:[#allocation2 + $0x370] sm:$0xf0]  ;;  %v2707_v23 = vor.u32 %v3587_v15, %v2704_v17  ;;  %v3683_v25 = vld [vmem:[#allocation2 + $0x564] sm:$0xf]  ;;  %v3638_v15 = vld [vmem:[#allocation2 + $0x3f4] sm:$0xf0]  ;;  %v2647_v17 = vor.u32 %v3574_v4, %v2646_v2 }
  0x52   :  { %1430 = vmatpush.bf16.msra.mxu3 %v3027_v36  ;;  %v2960_v21 = vld [vmem:[#allocation2 + $0x470] sm:$0xf0]  ;;  %v2835_v24 = vor.u32 %v3619_v18, %v2832_v19  ;;  %v3583_v27 = vld [vmem:[#allocation2 + $0x244] sm:$0xf]  ;;  %v3538_v18 = vld [vmem:[#allocation2 + $0xd4] sm:$0xf0] }
  0x53   :  { %1403 = vmatpush.bf16.msra.mxu0 %v2755_v46  ;;  %v3088_v26 = vld [vmem:[#allocation2 + $0x570] sm:$0xf0]  ;;  %v2963_v28 = vor.u32 %v3651_v20, %v2960_v21  ;;  %v3615_v30 = vld [vmem:[#allocation2 + $0x344] sm:$0xf]  ;;  %v2774_v20 = vld [vmem:[#allocation2 + $0x2e8] sm:$0xf] }
  0x54   :  { %1417 = vmatpush.bf16.msra.mxu1 %v2883_v47  ;;  %1396 = vmatmul.bf16.vlgmr.msra.gmra.mxu2 %v3928_v8  ;;  %v2688_v29 = vld [vmem:[#allocation2 + $0x250] sm:$0xf0]  ;;  %v3647_v32 = vld [vmem:[#allocation2 + $0x444] sm:$0xf]  ;;  %v3091_v34 = vor.u32 %v3683_v25, %v3088_v26  ;;  %v3606_v21 = vld [vmem:[#allocation2 + $0x2f4] sm:$0xf0]  ;;  %v2903_v25 = vor.u32 %v3638_v15, %v2902_v14 }
  0x55   :  { %1444 = vmatpush.bf16.msrb.mxu2 %v3155_v45  ;;  %v2816_v31 = vld [vmem:[#allocation2 + $0x350] sm:$0xf0]  ;;  %v2691_v35 = vor.u32 %v3583_v27, %v2688_v29  ;;  %v3679_v38 = vld [vmem:[#allocation2 + $0x544] sm:$0xf]  ;;  %v2886_v27 = vld [vmem:[#allocation2 + $0x3c8] sm:$0xf] }
  0x56   :  { %1431 = vmatpush.bf16.msra.mxu3 %v3011_v52  ;;  %v2944_v33 = vld [vmem:[#allocation2 + $0x450] sm:$0xf0]  ;;  %v2819_v36 = vor.u32 %v3615_v30, %v2816_v31  ;;  %v3579_v40 = vld [vmem:[#allocation2 + $0x224] sm:$0xf]  ;;  %v2486_v29 = vld [vmem:[#allocation2 + $0xa8] sm:$0xf]  ;;  %v2775_v30 = vor.u32 %v3606_v21, %v2774_v20 }
  0x57   :  { %1404 = vmatpush.bf16.msra.mxu0 %v2739_v62  ;;  %v3072_v39 = vld [vmem:[#allocation2 + $0x550] sm:$0xf0]  ;;  %v2947_v41 = vor.u32 %v3647_v32, %v2944_v33  ;;  %v3611_v44 = vld [vmem:[#allocation2 + $0x324] sm:$0xf]  ;;  %v3534_v32 = vld [vmem:[#allocation2 + $0xb4] sm:$0xf0] }
  0x58   :  { %1418 = vmatpush.bf16.msra.mxu1 %v2867_v63  ;;  %v2672_v43 = vld [vmem:[#allocation2 + $0x230] sm:$0xf0]  ;;  %v3643_v46 = vld [vmem:[#allocation2 + $0x424] sm:$0xf]  ;;  %v3075_v48 = vor.u32 %v3679_v38, %v3072_v39  ;;  %v2758_v33 = vld [vmem:[#allocation2 + $0x2c8] sm:$0xf] }
  0x59   :  { %1445 = vmatpush.bf16.msrb.mxu2 %v3139_v61  ;;  %v2800_v45 = vld [vmem:[#allocation2 + $0x330] sm:$0xf0]  ;;  %v3675_v49 = vld [vmem:[#allocation2 + $0x524] sm:$0xf]  ;;  %v2675_v52 = vor.u32 %v3579_v40, %v2672_v43  ;;  %v2870_v39 = vld [vmem:[#allocation2 + $0x3a8] sm:$0xf]  ;;  %v2487_v40 = vor.u32 %v3534_v32, %v2486_v29 }
  0x5a   :  { %1432 = vmatpush.bf16.msra.mxu3 %v2995_v3  ;;  %v2928_v47 = vld [vmem:[#allocation2 + $0x430] sm:$0xf0]  ;;  %v2803_v53 = vor.u32 %v3611_v44, %v2800_v45  ;;  %v3575_v55 = vld [vmem:[#allocation2 + $0x204] sm:$0xf]  ;;  %v2470_v43 = vld [vmem:[#allocation2 + $0x88] sm:$0xf] }
  0x5b   :  { %1405 = vmatpush.bf16.msra.mxu0 %v2723_v11  ;;  %v3056_v51 = vld [vmem:[#allocation2 + $0x530] sm:$0xf0]  ;;  %v3607_v57 = vld [vmem:[#allocation2 + $0x304] sm:$0xf]  ;;  %v2931_v59 = vor.u32 %v3643_v46, %v2928_v47  ;;  %v3530_v44 = vld [vmem:[#allocation2 + $0x94] sm:$0xf0] }
  0x5c   :  { %1419 = vmatpush.bf16.msra.mxu1 %v2851_v12  ;;  %v2656_v56 = vld [vmem:[#allocation2 + $0x210] sm:$0xf0]  ;;  %v3639_v62 = vld [vmem:[#allocation2 + $0x404] sm:$0xf]  ;;  %v3059_v3 = vor.u32 %v3675_v49, %v3056_v51  ;;  %v2742_v47 = vld [vmem:[#allocation2 + $0x2a8] sm:$0xf] }
  0x5d   :  { %1446 = vmatpush.bf16.msrb.mxu2 %v3123_v10  ;;  %v2784_v61 = vld [vmem:[#allocation2 + $0x310] sm:$0xf0]  ;;  %v3703_v5 = vld [vmem:[#allocation2 + $0x604] sm:$0xf]  ;;  %v2659_v7 = vor.u32 %v3575_v55, %v2656_v56  ;;  %v2598_v49 = vld [vmem:[#allocation2 + $0x188] sm:$0xf] }
  0x5e   :  { %1433 = vmatpush.bf16.msra.mxu3 %v2979_v16  ;;  %v2912_v63 = vld [vmem:[#allocation2 + $0x410] sm:$0xf0]  ;;  %v2787_v9 = vor.u32 %v3607_v57, %v2784_v61  ;;  %v3671_v10 = vld [vmem:[#allocation2 + $0x504] sm:$0xf]  ;;  %v2502_v16 = vld [vmem:[#allocation2 + $0xc8] sm:$0xf] }
  0x5f   :  { %1406 = vmatpush.bf16.msra.mxu0 %v2707_v23  ;;  %v3168_v6 = vld [vmem:[#allocation2 + $0x610] sm:$0xf0]  ;;  %v2915_v12 = vor.u32 %v3639_v62, %v2912_v63  ;;  %v2630_v23 = vld [vmem:[#allocation2 + $0x1c8] sm:$0xf]  ;;  %v2503_v26 = vor.u32 %v3538_v18, %v2502_v16  ;;  %v3562_v51 = vld [vmem:[#allocation2 + $0x194] sm:$0xf0] }
  0x60   :  { %1420 = vmatpush.bf16.msra.mxu1 %v2835_v24  ;;  %v3040_v11 = vld [vmem:[#allocation2 + $0x510] sm:$0xf0]  ;;  %v3171_v19 = vor.u32 %v3703_v5, %v3168_v6  ;;  %v3570_v24 = vld [vmem:[#allocation2 + $0x1d4] sm:$0xf0]  ;;  %v2854_v55 = vld [vmem:[#allocation2 + $0x388] sm:$0xf]  ;;  %v2599_v61 = vor.u32 %v3562_v51, %v2598_v49 }
  0x61   :  { %1447 = vmatpush.bf16.msrb.mxu2 %v3107_v22  ;;  %v3043_v22 = vor.u32 %v3671_v10, %v3040_v11  ;;  %v2631_v31 = vor.u32 %v3570_v24, %v2630_v23  ;;  %v3626_v56 = vld [vmem:[#allocation2 + $0x394] sm:$0xf0]  ;;  %v2454_v57 = vld [vmem:[#allocation2 + $0x68] sm:$0xf] }
  0x62   :  { %1434 = vmatpush.bf16.msra.mxu3 %v2963_v28  ;;  %v3634_v28 = vld [vmem:[#allocation2 + $0x3d4] sm:$0xf0]  ;;  %v2726_v63 = vld [vmem:[#allocation2 + $0x288] sm:$0xf] }
  0x63   :  { %1407 = vmatpush.bf16.msra.mxu0 %v2691_v35  ;;  %v2614_v35 = vld [vmem:[#allocation2 + $0x1a8] sm:$0xf]  ;;  %v2887_v38 = vor.u32 %v3634_v28, %v2886_v27  ;;  %v3526_v62 = vld [vmem:[#allocation2 + $0x74] sm:$0xf0] }
  0x64   :  { %1421 = vmatpush.bf16.msra.mxu1 %v2819_v36  ;;  %v3566_v36 = vld [vmem:[#allocation2 + $0x1b4] sm:$0xf0]  ;;  %v2582_v1 = vld [vmem:[#allocation2 + $0x168] sm:$0xf]  ;;  %v2455_v4 = vor.u32 %v3526_v62, %v2454_v57 }
  0x65   :  { %1448 = vmatpush.bf16.msrb.mxu2 %v3091_v34  ;;  %v3602_v34 = vld [vmem:[#allocation2 + $0x2d4] sm:$0xf0]  ;;  %v2615_v46 = vor.u32 %v3566_v36, %v2614_v35  ;;  %v2838_v5 = vld [vmem:[#allocation2 + $0x368] sm:$0xf] }
  0x66   :  { %1435 = vmatpush.bf16.msra.mxu3 %v2947_v41  ;;  %v3630_v41 = vld [vmem:[#allocation2 + $0x3b4] sm:$0xf0]  ;;  %v2759_v45 = vor.u32 %v3602_v34, %v2758_v33  ;;  %v2566_v14 = vld [vmem:[#allocation2 + $0x148] sm:$0xf] }
  0x67   :  { %1408 = vmatpush.bf16.msra.mxu0 %v2675_v52  ;;  %v2871_v52 = vor.u32 %v3630_v41, %v2870_v39  ;;  %v3594_v0 = vld [vmem:[#allocation2 + $0x294] sm:$0xf0]  ;;  %v2822_v18 = vld [vmem:[#allocation2 + $0x348] sm:$0xf] }
  0x68   :  { %1422 = vmatpush.bf16.msra.mxu1 %v2803_v53  ;;  %v2471_v53 = vor.u32 %v3530_v44, %v2470_v43  ;;  %v3558_v2 = vld [vmem:[#allocation2 + $0x174] sm:$0xf0]  ;;  %v2422_v20 = vld [vmem:[#allocation2 + $0x28] sm:$0xf] }
  0x69   :  { %1449 = vmatpush.bf16.msrb.mxu2 %v3075_v48  ;;  %v3598_v48 = vld [vmem:[#allocation2 + $0x2b4] sm:$0xf0]  ;;  %v2583_v10 = vor.u32 %v3558_v2, %v2582_v1  ;;  %v2694_v24 = vld [vmem:[#allocation2 + $0x248] sm:$0xf] }
  0x6a   :  { %1436 = vmatpush.bf16.msra.mxu3 %v2931_v59  ;;  %v2743_v59 = vor.u32 %v3598_v48, %v2742_v47  ;;  %v3622_v6 = vld [vmem:[#allocation2 + $0x374] sm:$0xf0]  ;;  %v2806_v29 = vld [vmem:[#allocation2 + $0x328] sm:$0xf] }
  0x6b   :  { %1409 = vmatpush.bf16.msra.mxu0 %v2659_v7  ;;  %v2438_v7 = vld [vmem:[#allocation2 + $0x48] sm:$0xf]  ;;  %v3522_v11 = vld [vmem:[#allocation2 + $0x54] sm:$0xf0]  ;;  %v2839_v16 = vor.u32 %v3622_v6, %v2838_v5 }
  0x6c   :  { %1423 = vmatpush.bf16.msra.mxu1 %v2787_v9  ;;  %v2727_v9 = vor.u32 %v3594_v0, %v2726_v63  ;;  %v3554_v15 = vld [vmem:[#allocation2 + $0x154] sm:$0xf0]  ;;  %v2406_v32 = vld [vmem:[#allocation2 + $0x8] sm:$0xf] }
  0x6d   :  { %1450 = vmatpush.bf16.msrb.mxu2 %v3059_v3  ;;  %v2855_v3 = vor.u32 %v3626_v56, %v2854_v55  ;;  %v3518_v23 = vld [vmem:[#allocation2 + $0x34] sm:$0xf0]  ;;  %v2534_v36 = vld [vmem:[#allocation2 + $0x108] sm:$0xf]  ;;  %v2520_v56 = vld [vmem:[#allocation2 + $0xf8] sm:$0xf0] }
  0x6e   :  { %1437 = vmatpush.bf16.msra.mxu3 %v2915_v12  ;;  %1410 = vmatmul.bf16.vlgmr.msra.gmra.mxu0 %v3914_v54  ;;  %v2710_v12 = vld [vmem:[#allocation2 + $0x268] sm:$0xf]  ;;  %v3550_v27 = vld [vmem:[#allocation2 + $0x134] sm:$0xf0] }
  0x6f   :  { %1465 = vmatpush.bf16.msrb.mxu0 %v3171_v19  ;;  %1424 = vmatmul.bf16.vlgmr.msra.gmra.mxu1 %v3918_v60  ;;  %v3618_v19 = vld [vmem:[#allocation2 + $0x354] sm:$0xf0]  ;;  %v3030_v41 = vld [vmem:[#allocation2 + $0x4e8] sm:$0xf] }
  0x70   :  { %1472 = vmatpush.bf16.msrb.mxu1 %v2519_v13  ;;  %v3590_v13 = vld [vmem:[#allocation2 + $0x274] sm:$0xf0]  ;;  %v2823_v28 = vor.u32 %v3618_v19, %v2822_v18  ;;  %v2790_v48 = vld [vmem:[#allocation2 + $0x308] sm:$0xf] }
  0x71   :  { %1451 = vmatpush.bf16.msrb.mxu2 %v3043_v22  ;;  %1438 = vmatmul.bf16.vlgmr.msra.gmra.mxu3 %v3954_v37  ;;  %v2711_v21 = vor.u32 %v3590_v13, %v2710_v12  ;;  %v2567_v22 = vor.u32 %v3554_v15, %v2566_v14  ;;  %v3514_v33 = vld [vmem:[#allocation2 + $0x14] sm:$0xf0]  ;;  %v3014_v57 = vld [vmem:[#allocation2 + $0x4c8] sm:$0xf]  ;;  %v3572_v15 = vld [vmem:[#allocation2 + $0x1ec] sm:$0xf] }
  0x72   :  { %1486 = vmatpush.bf16.msrb.mxu3 %v2647_v17  ;;  %v2439_v17 = vor.u32 %v3522_v11, %v2438_v7  ;;  %v3582_v39 = vld [vmem:[#allocation2 + $0x234] sm:$0xf0]  ;;  %v2407_v47 = vor.u32 %v3514_v33, %v2406_v32  ;;  %v3142_v62 = vld [vmem:[#allocation2 + $0x5c8] sm:$0xf]  ;;  %v3528_v33 = vld [vmem:[#allocation2 + $0x8c] sm:$0xf] }
  0x73   :  { %1500 = vmatpush.bf16.msra.mxu0 %v2775_v30  ;;  %v2423_v30 = vor.u32 %v3518_v23, %v2422_v20  ;;  %v3670_v43 = vld [vmem:[#allocation2 + $0x4f4] sm:$0xf0]  ;;  %v2662_v63 = vld [vmem:[#allocation2 + $0x208] sm:$0xf] }
  0x74   :  { %1473 = vmatpush.bf16.msrb.mxu1 %v2503_v26  ;;  %1452 = vmatmul.bf16.vlgmr.msrb.gmra.mxu2 %v3956_v42  ;;  %v2550_v26 = vld [vmem:[#allocation2 + $0x128] sm:$0xf]  ;;  %v3610_v49 = vld [vmem:[#allocation2 + $0x314] sm:$0xf0]  ;;  %v3031_v55 = vor.u32 %v3670_v43, %v3030_v41  ;;  %v2616_v41 = vld [vmem:[#allocation2 + $0x1b8] sm:$0xf0] }
  0x75   :  { %1514 = vmatpush.bf16.msra.mxu2 %v2903_v25  ;;  %v3586_v25 = vld [vmem:[#allocation2 + $0x254] sm:$0xf0]  ;;  %v2551_v35 = vor.u32 %v3550_v27, %v2550_v26  ;;  %v2791_v1 = vor.u32 %v3610_v49, %v2790_v48  ;;  %v2998_v11 = vld [vmem:[#allocation2 + $0x4a8] sm:$0xf]  ;;  %v3568_v27 = vld [vmem:[#allocation2 + $0x1cc] sm:$0xf] }
  0x76   :  { %1487 = vmatpush.bf16.msrb.mxu3 %v2631_v31  ;;  %v3614_v31 = vld [vmem:[#allocation2 + $0x334] sm:$0xf0]  ;;  %v2695_v34 = vor.u32 %v3586_v25, %v2694_v24  ;;  %v2982_v24 = vld [vmem:[#allocation2 + $0x488] sm:$0xf]  ;;  %v2456_v48 = vld [vmem:[#allocation2 + $0x78] sm:$0xf0] }
  0x77   :  { %1501 = vmatpush.bf16.msra.mxu0 %v2759_v45  ;;  %v2807_v44 = vor.u32 %v3614_v31, %v2806_v29  ;;  %v3158_v45 = vld [vmem:[#allocation2 + $0x5e8] sm:$0xf]  ;;  %v3578_v0 = vld [vmem:[#allocation2 + $0x214] sm:$0xf0] }
  0x78   :  { %1474 = vmatpush.bf16.msrb.mxu1 %v2487_v40  ;;  %v3546_v40 = vld [vmem:[#allocation2 + $0x114] sm:$0xf0]  ;;  %v2663_v7 = vor.u32 %v3578_v0, %v2662_v63  ;;  %v3110_v29 = vld [vmem:[#allocation2 + $0x588] sm:$0xf]  ;;  %v3520_v63 = vld [vmem:[#allocation2 + $0x4c] sm:$0xf] }
  0x79   :  { %1515 = vmatpush.bf16.msra.mxu2 %v2887_v38  ;;  %v2678_v38 = vld [vmem:[#allocation2 + $0x228] sm:$0xf]  ;;  %v3698_v2 = vld [vmem:[#allocation2 + $0x5d4] sm:$0xf0]  ;;  %v2440_v0 = vld [vmem:[#allocation2 + $0x58] sm:$0xf0] }
  0x7a   :  { %1488 = vmatpush.bf16.msrb.mxu3 %v2615_v46  ;;  %v3702_v46 = vld [vmem:[#allocation2 + $0x5f4] sm:$0xf0]  ;;  %v2679_v51 = vor.u32 %v3582_v39, %v2678_v38  ;;  %v3143_v12 = vor.u32 %v3698_v2, %v3142_v62  ;;  %v3094_v43 = vld [vmem:[#allocation2 + $0x568] sm:$0xf] }
  0x7b   :  { %1502 = vmatpush.bf16.msra.mxu0 %v2743_v59  ;;  %v3666_v59 = vld [vmem:[#allocation2 + $0x4d4] sm:$0xf0]  ;;  %v2934_v2 = vld [vmem:[#allocation2 + $0x428] sm:$0xf] }
  0x7c   :  { %1475 = vmatpush.bf16.msrb.mxu1 %v2471_v53  ;;  %v2535_v53 = vor.u32 %v3546_v40, %v2534_v36  ;;  %v3015_v6 = vor.u32 %v3666_v59, %v3014_v57  ;;  %v3662_v13 = vld [vmem:[#allocation2 + $0x4b4] sm:$0xf0]  ;;  %v2966_v36 = vld [vmem:[#allocation2 + $0x468] sm:$0xf]  ;;  %v3564_v40 = vld [vmem:[#allocation2 + $0x1ac] sm:$0xf] }
  0x7d   :  { %1516 = vmatpush.bf16.msra.mxu2 %v2871_v52  ;;  %v3540_v52 = vld [vmem:[#allocation2 + $0xec] sm:$0xf]  ;;  %v3694_v18 = vld [vmem:[#allocation2 + $0x5b4] sm:$0xf0]  ;;  %v2999_v20 = vor.u32 %v3662_v13, %v2998_v11  ;;  %v2619_v49 = vor.u32 %v3564_v40, %v2616_v41  ;;  %v3078_v57 = vld [vmem:[#allocation2 + $0x548] sm:$0xf] }
  0x7e   :  { %1489 = vmatpush.bf16.msrb.mxu3 %v2599_v61  ;;  %3181 = vmatmul.msk.bf16.vlgmr.msrb.gmra.mxu0 %vm1272_vm0, %v3938_v50  ;;  %v3159_v61 = vor.u32 %v3702_v46, %v3158_v45  ;;  %v2523_v5 = vor.u32 %v3540_v52, %v2520_v56  ;;  %v3658_v26 = vld [vmem:[#allocation2 + $0x494] sm:$0xf0]  ;;  %v2600_v56 = vld [vmem:[#allocation2 + $0x198] sm:$0xf0]  ;;  %v3516_v11 = vld [vmem:[#allocation2 + $0x2c] sm:$0xf] }
  0x7f   :  { %1503 = vmatpush.bf16.msra.mxu0 %v2727_v9  ;;  %v3536_v9 = vld [vmem:[#allocation2 + $0xcc] sm:$0xf]  ;;  %v2983_v32 = vor.u32 %v3658_v26, %v2982_v24  ;;  %v3654_v39 = vld [vmem:[#allocation2 + $0x474] sm:$0xf0]  ;;  %v2424_v13 = vld [vmem:[#allocation2 + $0x38] sm:$0xf0] }
  0x80   :  { %1476 = vmatpush.bf16.msrb.mxu1 %v2455_v4  ;;  %v3706_v4 = vld [vmem:[#allocation2 + $0x614] sm:$0xf0]  ;;  %v2967_v46 = vor.u32 %v3654_v39, %v2966_v36  ;;  %v2427_v24 = vor.u32 %v3516_v11, %v2424_v13  ;;  %v2904_v26 = vld [vmem:[#allocation2 + $0x3f8] sm:$0xf0]  ;;  %v3548_v39 = vld [vmem:[#allocation2 + $0x12c] sm:$0xf] }
  0x81   :  { %1517 = vmatpush.bf16.msra.mxu2 %v2855_v3  ;;  %v3174_v3 = vld [vmem:[#allocation2 + $0x608] sm:$0xf]  ;;  %v3682_v59 = vld [vmem:[#allocation2 + $0x554] sm:$0xf0]  ;;  %v2552_v40 = vld [vmem:[#allocation2 + $0x138] sm:$0xf0] }
  0x82   :  { %1490 = vmatpush.bf16.msrb.mxu3 %v2583_v10  ;;  %v2504_v10 = vld [vmem:[#allocation2 + $0xd8] sm:$0xf0]  ;;  %v3175_v14 = vor.u32 %v3706_v4, %v3174_v3  ;;  %v3079_v3 = vor.u32 %v3682_v59, %v3078_v57  ;;  %v3646_v4 = vld [vmem:[#allocation2 + $0x434] sm:$0xf0]  ;;  %v3696_v11 = vld [vmem:[#allocation2 + $0x5cc] sm:$0xf] }
  0x83   :  { %1504 = vmatpush.bf16.msra.mxu0 %v2711_v21  ;;  %v2507_v19 = vor.u32 %v3536_v9, %v2504_v10  ;;  %v3532_v21 = vld [vmem:[#allocation2 + $0xac] sm:$0xf]  ;;  %v3678_v9 = vld [vmem:[#allocation2 + $0x534] sm:$0xf0]  ;;  %v2443_v10 = vor.u32 %v3520_v63, %v2440_v0  ;;  %v2536_v57 = vld [vmem:[#allocation2 + $0x118] sm:$0xf0] }
  0x84   :  { %1477 = vmatpush.bf16.msrb.mxu1 %v2439_v17  ;;  %v3126_v17 = vld [vmem:[#allocation2 + $0x5a8] sm:$0xf]  ;;  %v2872_v59 = vld [vmem:[#allocation2 + $0x3b8] sm:$0xf0] }
  0x85   :  { %1518 = vmatpush.bf16.msra.mxu2 %v2839_v16  ;;  %v2648_v16 = vld [vmem:[#allocation2 + $0x1f8] sm:$0xf0]  ;;  %v3127_v25 = vor.u32 %v3694_v18, %v3126_v17  ;;  %v3046_v18 = vld [vmem:[#allocation2 + $0x508] sm:$0xf] }
  0x86   :  { %1491 = vmatpush.bf16.msrb.mxu3 %v2567_v22  ;;  %v2488_v22 = vld [vmem:[#allocation2 + $0xb8] sm:$0xf0]  ;;  %v2651_v23 = vor.u32 %v3572_v15, %v2648_v16  ;;  %v2918_v15 = vld [vmem:[#allocation2 + $0x408] sm:$0xf]  ;;  %v3642_v16 = vld [vmem:[#allocation2 + $0x414] sm:$0xf0] }
  0x87   :  { %1505 = vmatpush.bf16.msra.mxu0 %v2695_v34  ;;  %v2491_v31 = vor.u32 %v3532_v21, %v2488_v22  ;;  %v2472_v34 = vld [vmem:[#allocation2 + $0x98] sm:$0xf0]  ;;  %v3674_v21 = vld [vmem:[#allocation2 + $0x514] sm:$0xf0]  ;;  %v3604_v22 = vld [vmem:[#allocation2 + $0x2ec] sm:$0xf] }
  0x88   :  { %1478 = vmatpush.bf16.msrb.mxu1 %v2423_v30  ;;  %v3690_v30 = vld [vmem:[#allocation2 + $0x594] sm:$0xf0]  ;;  %v2475_v45 = vor.u32 %v3528_v33, %v2472_v34  ;;  %v3668_v33 = vld [vmem:[#allocation2 + $0x4ec] sm:$0xf]  ;;  %v3032_v34 = vld [vmem:[#allocation2 + $0x4f8] sm:$0xf0] }
  0x89   :  { %1519 = vmatpush.bf16.msra.mxu2 %v2823_v28  ;;  %v2632_v28 = vld [vmem:[#allocation2 + $0x1d8] sm:$0xf0]  ;;  %v3111_v38 = vor.u32 %v3690_v30, %v3110_v29 }
  0x8a   :  { %1492 = vmatpush.bf16.msrb.mxu3 %v2551_v35  ;;  %v2635_v35 = vor.u32 %v3568_v27, %v2632_v28  ;;  %v2919_v27 = vor.u32 %v3642_v16, %v2918_v15  ;;  %v3512_v28 = vld [vmem:[#allocation2 + $0xc] sm:$0xf]  ;;  %v2408_v29 = vld [vmem:[#allocation2 + $0x18] sm:$0xf0] }
  0x8b   :  { %1506 = vmatpush.bf16.msra.mxu0 %v2679_v51  ;;  %v2950_v51 = vld [vmem:[#allocation2 + $0x448] sm:$0xf]  ;;  %v2411_v41 = vor.u32 %v3512_v28, %v2408_v29  ;;  %v3656_v15 = vld [vmem:[#allocation2 + $0x48c] sm:$0xf]  ;;  %v2984_v16 = vld [vmem:[#allocation2 + $0x498] sm:$0xf0] }
  0x8c   :  { %1479 = vmatpush.bf16.msrb.mxu1 %v2407_v47  ;;  %v3524_v47 = vld [vmem:[#allocation2 + $0x6c] sm:$0xf] }
  0x8d   :  { %1520 = vmatpush.bf16.msra.mxu2 %v2807_v44  ;;  %v3686_v44 = vld [vmem:[#allocation2 + $0x574] sm:$0xf0] }
  0x8e   :  { %1493 = vmatpush.bf16.msrb.mxu3 %v2535_v53  ;;  %v3095_v52 = vor.u32 %v3686_v44, %v3094_v43  ;;  %v3650_v53 = vld [vmem:[#allocation2 + $0x454] sm:$0xf0]  ;;  %v3632_v43 = vld [vmem:[#allocation2 + $0x3cc] sm:$0xf]  ;;  %v2888_v44 = vld [vmem:[#allocation2 + $0x3d8] sm:$0xf0] }
  0x8f   :  { %1480 = vmatmul.bf16.vlgmr.msrb.gmra.mxu1 %v3916_v58  ;;  %1507 = vmatpush.bf16.msra.mxu0 %v2663_v7  ;;  %v2951_v62 = vor.u32 %v3650_v53, %v2950_v51  ;;  %v3062_v7 = vld [vmem:[#allocation2 + $0x528] sm:$0xf]  ;;  %v3596_v51 = vld [vmem:[#allocation2 + $0x2ac] sm:$0xf]  ;;  %v2891_v53 = vor.u32 %v3632_v43, %v2888_v44  ;;  %v2680_v44 = vld [vmem:[#allocation2 + $0x238] sm:$0xf0] }
  0x90   :  { %1528 = vmatpush.bf16.msra.mxu1 %v3031_v55  ;;  %v3560_v55 = vld [vmem:[#allocation2 + $0x18c] sm:$0xf]  ;;  %v3063_v17 = vor.u32 %v3678_v9, %v3062_v7  ;;  %v2728_v7 = vld [vmem:[#allocation2 + $0x298] sm:$0xf0] }
  0x91   :  { %1521 = vmatpush.bf16.msra.mxu2 %v2791_v1  ;;  %1494 = vmatmul.bf16.vlgmr.msrb.gmra.mxu3 %v3928_v8  ;;  %v2603_v1 = vor.u32 %v3560_v55, %v2600_v56  ;;  %v3628_v55 = vld [vmem:[#allocation2 + $0x3ac] sm:$0xf] }
  0x92   :  { %1542 = vmatpush.bf16.msra.mxu3 %v3159_v61  ;;  %1508 = vmatmul.bf16.vlgmr.msra.gmra.mxu0 %v3914_v54  ;;  %v2459_v61 = vor.u32 %v3524_v47, %v2456_v48  ;;  %v2555_v48 = vor.u32 %v3548_v39, %v2552_v40  ;;  %v3544_v56 = vld [vmem:[#allocation2 + $0x10c] sm:$0xf] }
  0x93   :  { %1563 = vmatpush.bf16.msrb.mxu0 %v3175_v14  ;;  %v3624_v9 = vld [vmem:[#allocation2 + $0x38c] sm:$0xf] }
  0x94   :  { %1529 = vmatpush.bf16.msra.mxu1 %v3015_v6  ;;  %1522 = vmatmul.bf16.vlgmr.msra.gmra.mxu2 %v3918_v60  ;;  %v2584_v6 = vld [vmem:[#allocation2 + $0x178] sm:$0xf0]  ;;  %v3648_v39 = vld [vmem:[#allocation2 + $0x44c] sm:$0xf] }
  0x95   :  { %1570 = vmatpush.bf16.msrb.mxu2 %v2523_v5  ;;  %v3556_v5 = vld [vmem:[#allocation2 + $0x16c] sm:$0xf] }
  0x96   :  { %1543 = vmatpush.bf16.msra.mxu3 %v3143_v12  ;;  %v2935_v12 = vor.u32 %v3646_v4, %v2934_v2  ;;  %v2587_v14 = vor.u32 %v3556_v5, %v2584_v6  ;;  %v3660_v2 = vld [vmem:[#allocation2 + $0x4ac] sm:$0xf]  ;;  %v2875_v4 = vor.u32 %v3628_v55, %v2872_v59 }
  0x97   :  { %1584 = vmatpush.bf16.msra.mxu0 %v2651_v23  ;;  %v2776_v23 = vld [vmem:[#allocation2 + $0x2f8] sm:$0xf0]  ;;  %v3592_v6 = vld [vmem:[#allocation2 + $0x28c] sm:$0xf] }
  0x98   :  { %1530 = vmatpush.bf16.msra.mxu1 %v2999_v20  ;;  %v2568_v20 = vld [vmem:[#allocation2 + $0x158] sm:$0xf0]  ;;  %v3580_v43 = vld [vmem:[#allocation2 + $0x22c] sm:$0xf] }
  0x99   :  { %1571 = vmatpush.bf16.msrb.mxu2 %v2507_v19  ;;  %v3552_v19 = vld [vmem:[#allocation2 + $0x14c] sm:$0xf] }
  0x9a   :  { %1544 = vmatpush.bf16.msra.mxu3 %v3127_v25  ;;  %v3636_v25 = vld [vmem:[#allocation2 + $0x3ec] sm:$0xf]  ;;  %v2571_v30 = vor.u32 %v3552_v19, %v2568_v20 }
  0x9b   :  { %1585 = vmatpush.bf16.msra.mxu0 %v2635_v35  ;;  %v3600_v35 = vld [vmem:[#allocation2 + $0x2cc] sm:$0xf]  ;;  %v2907_v36 = vor.u32 %v3636_v25, %v2904_v26 }
  0x9c   :  { %1531 = vmatpush.bf16.msra.mxu1 %v2983_v32  ;;  %v2779_v32 = vor.u32 %v3604_v22, %v2776_v23  ;;  %v3588_v19 = vld [vmem:[#allocation2 + $0x26c] sm:$0xf]  ;;  %v3128_v23 = vld [vmem:[#allocation2 + $0x5b8] sm:$0xf0] }
  0x9d   :  { %1572 = vmatpush.bf16.msrb.mxu2 %v2491_v31  ;;  %v3047_v31 = vor.u32 %v3674_v21, %v3046_v18  ;;  %v3620_v20 = vld [vmem:[#allocation2 + $0x36c] sm:$0xf]  ;;  %v2840_v21 = vld [vmem:[#allocation2 + $0x378] sm:$0xf0] }
  0x9e   :  { %1545 = vmatpush.bf16.msra.mxu3 %v3111_v38  ;;  %v2760_v38 = vld [vmem:[#allocation2 + $0x2d8] sm:$0xf0]  ;;  %v3692_v22 = vld [vmem:[#allocation2 + $0x5ac] sm:$0xf]  ;;  %v2843_v28 = vor.u32 %v3620_v20, %v2840_v21  ;;  %v3234_v21 = vld [vmem:[#allocation4 + $0x60] sm:$0xf] }
  0x9f   :  { %1586 = vmatpush.bf16.msra.mxu0 %v2619_v49  ;;  %v2763_v47 = vor.u32 %v3600_v35, %v2760_v38  ;;  %v3016_v49 = vld [vmem:[#allocation2 + $0x4d8] sm:$0xf0]  ;;  %v3652_v26 = vld [vmem:[#allocation2 + $0x46c] sm:$0xf]  ;;  %v3131_v29 = vor.u32 %v3692_v22, %v3128_v23  ;;  %v3720_v22 = vld [vmem:[#allocation4 + $0x64] sm:$0xf0] }
  0xa0   :  { %1532 = vmatpush.bf16.msra.mxu1 %v2967_v46  ;;  %v3664_v46 = vld [vmem:[#allocation2 + $0x4cc] sm:$0xf]  ;;  %v3112_v35 = vld [vmem:[#allocation2 + $0x598] sm:$0xf0] }
  0xa1   :  { %1573 = vmatpush.bf16.msrb.mxu2 %v2475_v45  ;;  %v3035_v45 = vor.u32 %v3668_v33, %v3032_v34  ;;  %v3019_v63 = vor.u32 %v3664_v46, %v3016_v49  ;;  %v2824_v33 = vld [vmem:[#allocation2 + $0x358] sm:$0xf0]  ;;  %v3688_v34 = vld [vmem:[#allocation2 + $0x58c] sm:$0xf] }
  0xa2   :  { %1546 = vmatpush.bf16.msra.mxu3 %v3095_v52  ;;  %3182 = vmatmul.msk.bf16.vlgmr.msrb.gmra.mxu0 %vm1272_vm0, %v3938_v50  ;;  %v2744_v52 = vld [vmem:[#allocation2 + $0x2b8] sm:$0xf0]  ;;  %v3576_v55 = vld [vmem:[#allocation2 + $0x20c] sm:$0xf] }
  0xa3   :  { %1587 = vmatpush.bf16.msra.mxu0 %v2603_v1  ;;  %v2747_v0 = vor.u32 %v3596_v51, %v2744_v52  ;;  %v2539_v1 = vor.u32 %v3544_v56, %v2536_v57  ;;  %v2808_v46 = vld [vmem:[#allocation2 + $0x338] sm:$0xf0]  ;;  %v2683_v51 = vor.u32 %v3580_v43, %v2680_v44  ;;  %v3644_v52 = vld [vmem:[#allocation2 + $0x42c] sm:$0xf]  ;;  %v3716_v43 = vld [vmem:[#allocation4 + $0x44] sm:$0xf0] }
  0xa4   :  { %1533 = vmatpush.bf16.msra.mxu1 %v2951_v62  ;;  %v3160_v62 = vld [vmem:[#allocation2 + $0x5f8] sm:$0xf0] }
  0xa5   :  { %1574 = vmatpush.bf16.msrb.mxu2 %v2459_v61  ;;  %v3700_v61 = vld [vmem:[#allocation2 + $0x5ec] sm:$0xf] }
  0xa6   :  { %1547 = vmatpush.bf16.msra.mxu3 %v3079_v3  ;;  %v3000_v3 = vld [vmem:[#allocation2 + $0x4b8] sm:$0xf0]  ;;  %v3163_v5 = vor.u32 %v3700_v61, %v3160_v62  ;;  %v3608_v62 = vld [vmem:[#allocation2 + $0x30c] sm:$0xf] }
  0xa7   :  { %1588 = vmatpush.bf16.msra.mxu0 %v2587_v14  ;;  %v3003_v13 = vor.u32 %v3660_v2, %v3000_v3  ;;  %v2731_v14 = vor.u32 %v3592_v6, %v2728_v7  ;;  %v2664_v61 = vld [vmem:[#allocation2 + $0x218] sm:$0xf0]  ;;  %v3680_v2 = vld [vmem:[#allocation2 + $0x54c] sm:$0xf]  ;;  %v3722_v6 = vld [vmem:[#allocation4 + $0x74] sm:$0xf0] }
  0xa8   :  { %1534 = vmatpush.bf16.msra.mxu1 %v2935_v12  ;;  %v3144_v12 = vld [vmem:[#allocation2 + $0x5d8] sm:$0xf0]  ;;  %v3306_v7 = vld [vmem:[#allocation4 + $0xf0] sm:$0xf] }
  0xa9   :  { %1575 = vmatpush.bf16.msrb.mxu2 %v2443_v10  ;;  %v2856_v10 = vld [vmem:[#allocation2 + $0x398] sm:$0xf0]  ;;  %v3147_v18 = vor.u32 %v3696_v11, %v3144_v12  ;;  %v3640_v11 = vld [vmem:[#allocation2 + $0x40c] sm:$0xf] }
  0xaa   :  { %1548 = vmatpush.bf16.msra.mxu3 %v3063_v17  ;;  %v2859_v17 = vor.u32 %v3624_v9, %v2856_v10  ;;  %v3080_v3 = vld [vmem:[#allocation2 + $0x558] sm:$0xf0]  ;;  %v3738_v9 = vld [vmem:[#allocation4 + $0xf4] sm:$0xf0]  ;;  %v2667_v10 = vor.u32 %v3576_v55, %v2664_v61 }
  0xab   :  { %1589 = vmatpush.bf16.msra.mxu0 %v2571_v30  ;;  %v3584_v30 = vld [vmem:[#allocation2 + $0x24c] sm:$0xf]  ;;  %v2920_v12 = vld [vmem:[#allocation2 + $0x418] sm:$0xf0] }
  0xac   :  { %1535 = vmatpush.bf16.msra.mxu1 %v2919_v27  ;;  %v2968_v27 = vld [vmem:[#allocation2 + $0x478] sm:$0xf0]  ;;  %v2923_v20 = vor.u32 %v3640_v11, %v2920_v12  ;;  %v3710_v11 = vld [vmem:[#allocation4 + $0x14] sm:$0xf0] }
  0xad   :  { %1576 = vmatpush.bf16.msrb.mxu2 %v2427_v24  ;;  %v2987_v24 = vor.u32 %v3656_v15, %v2984_v16  ;;  %v3704_v15 = vld [vmem:[#allocation2 + $0x60c] sm:$0xf]  ;;  %v3176_v16 = vld [vmem:[#allocation2 + $0x618] sm:$0xf0] }
  0xae   :  { %1549 = vmatpush.bf16.msra.mxu3 %v3047_v31  ;;  %v2696_v31 = vld [vmem:[#allocation2 + $0x258] sm:$0xf0]  ;;  %v3179_v23 = vor.u32 %v3704_v15, %v3176_v16  ;;  %v3258_v15 = vld [vmem:[#allocation4 + $0x90] sm:$0xf]  ;;  %v3726_v16 = vld [vmem:[#allocation4 + $0x94] sm:$0xf0] }
  0xaf   :  { %1536 = vmatmul.bf16.vlgmr.msra.gmra.mxu1 %v3954_v37  ;;  %1590 = vmatpush.bf16.msra.mxu0 %v2555_v48  ;;  %v2699_v38 = vor.u32 %v3584_v30, %v2696_v31  ;;  %v3096_v48 = vld [vmem:[#allocation2 + $0x578] sm:$0xf0]  ;;  %v1285_v56 = vpop.f32.mrf.mxu0  ;;  %v3226_v31 = vld [vmem:[#allocation4 + $0x50] sm:$0xf] }
  0xb0   :  { %1598 = vmatpush.bf16.msrb.mxu1 %v2779_v32  ;;  %v3616_v32 = vld [vmem:[#allocation2 + $0x34c] sm:$0xf] }
  0xb1   :  { %1577 = vmatpush.bf16.msrb.mxu2 %v2411_v41  ;;  %1550 = vmatmul.bf16.vlgmr.msra.gmra.mxu3 %v3956_v42  ;;  %v2827_v40 = vor.u32 %v3616_v32, %v2824_v33  ;;  %v3115_v41 = vor.u32 %v3688_v34, %v3112_v35  ;;  %v3718_v32 = vld [vmem:[#allocation4 + $0x54] sm:$0xf0]  ;;  %v3290_v35 = vld [vmem:[#allocation4 + $0xd0] sm:$0xf] }
  0xb2   :  { %1612 = vmatpush.bf16.msrb.mxu3 %v2907_v36  ;;  %v2971_v36 = vor.u32 %v3652_v26, %v2968_v27  ;;  %v3235_v27 = vor.u32 %v3720_v22, %v3234_v21  ;;  %v3708_v21 = vld [vmem:[#allocation4 + $0x4] sm:$0xf0]  ;;  %v3721_v22 = vld [vmem:[#allocation4 + $0x74] sm:$0xf] }
  0xb3   :  { %1591 = vmatpush.bf16.msra.mxu0 %v2539_v1  ;;  %v3242_v1 = vld [vmem:[#allocation4 + $0x70] sm:$0xf] }
  0xb4   :  { %1599 = vmatpush.bf16.msrb.mxu1 %v2763_v47  ;;  %1578 = vmatmul.bf16.vlgmr.msrb.gmra.mxu2 %v3916_v58  ;;  %v2712_v58 = vld [vmem:[#allocation2 + $0x278] sm:$0xf0]  ;;  %v3684_v47 = vld [vmem:[#allocation2 + $0x56c] sm:$0xf] }
  0xb5   :  { %1626 = vmatpush.bf16.msra.mxu2 %v3035_v45  ;;  %v2715_v25 = vor.u32 %v3588_v19, %v2712_v58  ;;  %v3612_v45 = vld [vmem:[#allocation2 + $0x32c] sm:$0xf]  ;;  %v3099_v59 = vor.u32 %v3684_v47, %v3096_v48  ;;  %v3064_v19 = vld [vmem:[#allocation2 + $0x538] sm:$0xf0]  ;;  %v3307_v58 = vor.u32 %v3738_v9, %v3306_v7 }
  0xb6   :  { %1613 = vmatpush.bf16.msrb.mxu3 %v2891_v53  ;;  %1592 = vmatmul.bf16.vlgmr.msra.gmra.mxu0 %v3928_v8  ;;  %v2952_v8 = vld [vmem:[#allocation2 + $0x458] sm:$0xf0]  ;;  %v2811_v57 = vor.u32 %v3612_v45, %v2808_v46  ;;  %v3282_v45 = vld [vmem:[#allocation4 + $0xc0] sm:$0xf]  ;;  %v3732_v46 = vld [vmem:[#allocation4 + $0xc4] sm:$0xf0] }
  0xb7   :  { %1640 = vmatpush.bf16.msrb.mxu0 %v3163_v5  ;;  %v2955_v49 = vor.u32 %v3648_v39, %v2952_v8  ;;  %v2936_v53 = vld [vmem:[#allocation2 + $0x438] sm:$0xf0]  ;;  %v1287_v30 = vpop.f32.mrf.mxu0  ;;  %v1327_v39 = vpop.f32.mrf.mxu3 }
  0xb8   :  { %1600 = vmatpush.bf16.msrb.mxu1 %v2747_v0  ;;  %v1299_v0 = vpop.f32.mrf.mxu1  ;;  %v2939_v5 = vor.u32 %v3644_v52, %v2936_v53  ;;  %v3714_v52 = vld [vmem:[#allocation4 + $0x34] sm:$0xf0]  ;;  %v3283_v53 = vor.u32 %v3732_v46, %v3282_v45  ;;  %v3733_v46 = vld [vmem:[#allocation4 + $0xd4] sm:$0xf] }
  0xb9   :  { %1627 = vmatpush.bf16.msra.mxu2 %v3019_v63  ;;  %v2792_v63 = vld [vmem:[#allocation2 + $0x318] sm:$0xf0] }
  0xba   :  { %1614 = vmatpush.bf16.msrb.mxu3 %v2875_v4  ;;  %v1313_v4 = vpop.f32.mrf.mxu2 }
  0xbb   :  { %1641 = vmatpush.bf16.msrb.mxu0 %v3147_v18  ;;  %v3676_v18 = vld [vmem:[#allocation2 + $0x52c] sm:$0xf] }
  0xbc   :  { %1601 = vmatpush.bf16.msrb.mxu1 %v2731_v14  ;;  %v3083_v14 = vor.u32 %v3680_v2, %v3080_v3  ;;  %v3067_v26 = vor.u32 %v3676_v18, %v3064_v19  ;;  %v3712_v2 = vld [vmem:[#allocation4 + $0x24] sm:$0xf0] }
  0xbd   :  { %1628 = vmatpush.bf16.msra.mxu2 %v3003_v13  ;;  %v2795_v13 = vor.u32 %v3608_v62, %v2792_v63 }
  0xbe   :  { %1615 = vmatpush.bf16.msrb.mxu3 %v2859_v17  ;;  %v3243_v17 = vor.u32 %v3722_v6, %v3242_v1  ;;  %v3202_v1 = vld [vmem:[#allocation4 + $0x20] sm:$0xf] }
  0xbf   :  { %1642 = vmatpush.bf16.msrb.mxu0 %v3131_v29  ;;  %v3048_v29 = vld [vmem:[#allocation2 + $0x518] sm:$0xf0]  ;;  %v1329_v63 = vpop.f32.mrf.mxu3  ;;  %v3203_v7 = vor.u32 %v3712_v2, %v3202_v1  ;;  %v3754_v2 = vld [vmem:[#allocation4 + $0x174] sm:$0xf0] }
  0xc0   :  { %1602 = vmatpush.bf16.msrb.mxu1 %v2715_v25  ;;  %v3736_v25 = vld [vmem:[#allocation4 + $0xe4] sm:$0xf0]  ;;  %v1301_v34 = vpop.f32.mrf.mxu1  ;;  %v3276_v1 = vld [vmem:[#allocation4 + $0xb8] sm:$0xf0] }
  0xc1   :  { %1629 = vmatpush.bf16.msra.mxu2 %v2987_v24  ;;  %v3298_v24 = vld [vmem:[#allocation4 + $0xe0] sm:$0xf] }
  0xc2   :  { %1616 = vmatpush.bf16.msrb.mxu3 %v2843_v28  ;;  %v3672_v28 = vld [vmem:[#allocation2 + $0x50c] sm:$0xf]  ;;  %v3299_v33 = vor.u32 %v3736_v25, %v3298_v24  ;;  %v1315_v8 = vpop.f32.mrf.mxu2  ;;  %v3244_v25 = vld [vmem:[#allocation4 + $0x78] sm:$0xf0] }
  0xc3   :  { %1643 = vmatpush.bf16.msrb.mxu0 %v3115_v41  ;;  %v3227_v41 = vor.u32 %v3718_v32, %v3226_v31 }
  0xc4   :  { %1603 = vmatpush.bf16.msrb.mxu1 %v2699_v38  ;;  %v1300_v38 = vadd.f32 %v1299_v0, %v1285_v56  ;;  %v3730_v56 = vld [vmem:[#allocation4 + $0xb4] sm:$0xf0] }
  0xc5   :  { %1630 = vmatpush.bf16.msra.mxu2 %v2971_v36  ;;  %v3734_v36 = vld [vmem:[#allocation4 + $0xd4] sm:$0xf0] }
  0xc6   :  { %1617 = vmatpush.bf16.msrb.mxu3 %v2827_v40  ;;  %v3051_v40 = vor.u32 %v3672_v28, %v3048_v29  ;;  %v3291_v44 = vor.u32 %v3734_v36, %v3290_v35  ;;  %v1314_v47 = vadd.f32 %v1313_v4, %v1300_v38  ;;  %v3266_v4 = vld [vmem:[#allocation4 + $0xa0] sm:$0xf]  ;;  %v3737_v28 = vld [vmem:[#allocation4 + $0xf4] sm:$0xf]  ;;  %v3308_v29 = vld [vmem:[#allocation4 + $0xf8] sm:$0xf0] }
  0xc7   :  { %1644 = vmatpush.bf16.msrb.mxu0 %v3099_v59  ;;  %v3719_v35 = vld [vmem:[#allocation4 + $0x64] sm:$0xf]  ;;  %v3236_v36 = vld [vmem:[#allocation4 + $0x68] sm:$0xf0]  ;;  %v3311_v38 = vor.u32 %v3737_v28, %v3308_v29 }
  0xc8   :  { %1604 = vmatpush.bf16.msrb.mxu1 %v2683_v51  ;;  %v3210_v51 = vld [vmem:[#allocation4 + $0x30] sm:$0xf] }
  0xc9   :  { %1631 = vmatpush.bf16.msra.mxu2 %v2955_v49  ;;  %v3211_v62 = vor.u32 %v3714_v52, %v3210_v51  ;;  %v3731_v52 = vld [vmem:[#allocation4 + $0xc4] sm:$0xf] }
  0xca   :  { %1618 = vmatpush.bf16.msrb.mxu3 %v2811_v57  ;;  %v1328_v57 = vadd.f32 %v1327_v39, %v1314_v47  ;;  %v1369_v59 = vpop.f32.mrf.mxu2  ;;  %v3292_v47 = vld [vmem:[#allocation4 + $0xd8] sm:$0xf0] }
  0xcb   :  { %1645 = vmatpush.bf16.msrb.mxu0 %v3083_v14  ;;  %v1341_v49 = vpop.f32.mrf.mxu0  ;;  %v3295_v51 = vor.u32 %v3733_v46, %v3292_v47  ;;  %v3338_v46 = vld [vmem:[#allocation4 + $0x130] sm:$0xf]  ;;  %v3746_v47 = vld [vmem:[#allocation4 + $0x134] sm:$0xf0] }
  0xcc   :  { %1605 = vmatpush.bf16.msrb.mxu1 %v2667_v10  ;;  %v1355_v55 = vpop.f32.mrf.mxu1  ;;  %v1342_v0 = vadd.f32 %v1341_v49, %v1328_v57  ;;  %v3194_v10 = vld [vmem:[#allocation4 + $0x10] sm:$0xf]  ;;  %v3220_v49 = vld [vmem:[#allocation4 + $0x48] sm:$0xf0]  ;;  %v3212_v57 = vld [vmem:[#allocation4 + $0x38] sm:$0xf0] }
  0xcd   :  { %1632 = vmatpush.bf16.msra.mxu2 %v2939_v5  ;;  %v3728_v5 = vld [vmem:[#allocation4 + $0xa4] sm:$0xf0]  ;;  %v3195_v18 = vor.u32 %v3710_v11, %v3194_v10  ;;  %v3727_v10 = vld [vmem:[#allocation4 + $0xa4] sm:$0xf]  ;;  %v3268_v11 = vld [vmem:[#allocation4 + $0xa8] sm:$0xf0] }
  0xce   :  { %1619 = vmatpush.bf16.msrb.mxu3 %v2795_v13  ;;  %v1356_v9 = vadd.f32 %v1355_v55, %v1342_v0  ;;  %v3267_v12 = vor.u32 %v3728_v5, %v3266_v4  ;;  %v3729_v0 = vld [vmem:[#allocation4 + $0xb4] sm:$0xf] }
  0xcf   :  { %1606 = vmatmul.bf16.vlgmr.msrb.gmra.mxu1 %v3914_v54  ;;  %1646 = vmatpush.bf16.msrb.mxu0 %v3067_v26  ;;  %v3218_v54 = vld [vmem:[#allocation4 + $0x40] sm:$0xf] }
  0xd0   :  { %2078 = vmatpush.bf16.msra.mxu1 %v3307_v58  ;;  %v3219_v48 = vor.u32 %v3716_v43, %v3218_v54  ;;  %v1370_v19 = vadd.f32 %v1369_v59, %v1356_v9  ;;  %v3250_v26 = vld [vmem:[#allocation4 + $0x80] sm:$0xf]  ;;  %v3239_v54 = vor.u32 %v3719_v35, %v3236_v36  ;;  %v3717_v43 = vld [vmem:[#allocation4 + $0x54] sm:$0xf]  ;;  %v3204_v9 = vld [vmem:[#allocation4 + $0x28] sm:$0xf0] }
  0xd1   :  { %1633 = vmatpush.bf16.msra.mxu2 %v2923_v20  ;;  %1620 = vmatmul.bf16.vlgmr.msrb.gmra.mxu3 %v3918_v60  ;;  %v1302_v60 = vadd.f32 %v1301_v34, %v1287_v30  ;;  %v3186_v20 = vld [vmem:[#allocation4] sm:$0xf]  ;;  %v3252_v35 = vld [vmem:[#allocation4 + $0x88] sm:$0xf0] }
  0xd2   :  { %2064 = vmatpush.bf16.msra.mxu3 %v3243_v17  ;;  %v1371_v58 = vpop.f32.mrf.mxu2  ;;  %v3187_v31 = vor.u32 %v3708_v21, %v3186_v20  ;;  %v1668_v32 = vmax.f32 %v1370_v19, 0.0  ;;  %v3362_v19 = vld [vmem:[#allocation4 + $0x160] sm:$0xf]  ;;  %v3725_v21 = vld [vmem:[#allocation4 + $0x94] sm:$0xf] }
  0xd3   :  { %1647 = vmatpush.bf16.msrb.mxu0 %v3051_v40  ;;  %v1316_v61 = vadd.f32 %v1315_v8, %v1302_v60  ;;  %v3735_v8 = vld [vmem:[#allocation4 + $0xe4] sm:$0xf]  ;;  %v3300_v40 = vld [vmem:[#allocation4 + $0xe8] sm:$0xf0] }
  0xd4   :  { %1634 = vmatmul.bf16.vlgmr.msra.gmra.mxu2 %v3954_v37  ;;  %2079 = vmatpush.bf16.msra.mxu1 %v3299_v33  ;;  %v3274_v37 = vld [vmem:[#allocation4 + $0xb0] sm:$0xf]  ;;  %v1357_v14 = vpop.f32.mrf.mxu1  ;;  %v3247_v33 = vor.u32 %v3721_v22, %v3244_v25  ;;  %v1383_v34 = vpop.f32.mrf.mxu3  ;;  %v3303_v45 = vor.u32 %v3735_v8, %v3300_v40  ;;  %v3260_v22 = vld [vmem:[#allocation4 + $0x98] sm:$0xf0] }
  0xd5   :  { %1661 = vmatpush.bf16.msrb.mxu2 %v3179_v23  ;;  %v3275_v3 = vor.u32 %v3730_v56, %v3274_v37  ;;  %v1330_v6 = vadd.f32 %v1329_v63, %v1316_v61  ;;  %v3259_v23 = vor.u32 %v3726_v16, %v3258_v15  ;;  %v3713_v56 = vld [vmem:[#allocation4 + $0x34] sm:$0xf]  ;;  %v3370_v61 = vld [vmem:[#allocation4 + $0x170] sm:$0xf] }
  0xd6   :  { %2065 = vmatpush.bf16.msra.mxu3 %v3235_v27  ;;  %1648 = vmatmul.bf16.vlgmr.msrb.gmra.mxu0 %v3956_v42  ;;  %v1343_v42 = vpop.f32.mrf.mxu0  ;;  %v3724_v27 = vld [vmem:[#allocation4 + $0x84] sm:$0xf0]  ;;  %v3215_v4 = vor.u32 %v3713_v56, %v3212_v57 }
  0xd7   :  { %v1344_v13 = vadd.f32 %v1343_v42, %v1330_v6  ;;  %v3279_v42 = vor.u32 %v3729_v0, %v3276_v1  ;;  %v3742_v0 = vld [vmem:[#allocation4 + $0x114] sm:$0xf0] }
  0xd8   :  { %2080 = vmatpush.bf16.msra.mxu1 %v3291_v44  ;;  %v3228_v44 = vld [vmem:[#allocation4 + $0x58] sm:$0xf0] }
  0xd9   :  { %v1358_v17 = vadd.f32 %v1357_v14, %v1344_v13  ;;  %v3231_v60 = vor.u32 %v3717_v43, %v3228_v44  ;;  %v3709_v13 = vld [vmem:[#allocation4 + $0x14] sm:$0xf] }
  0xda   :  { %2066 = vmatpush.bf16.msra.mxu3 %v3227_v41  ;;  %v1397_v41 = vpop.f32.mrf.mxu2 }
  0xdb   :  { %v1372_v24 = vadd.f32 %v1371_v58, %v1358_v17  ;;  %v1398_v5 = vadd.f32 %v1397_v41, %v1383_v34  ;;  %v3196_v17 = vld [vmem:[#allocation4 + $0x18] sm:$0xf0]  ;;  %v3752_v58 = vld [vmem:[#allocation4 + $0x164] sm:$0xf0]  ;;  %v3723_v34 = vld [vmem:[#allocation4 + $0x84] sm:$0xf] }
  0xdc   :  { %2081 = vmatpush.bf16.msra.mxu1 %v3283_v53  ;;  %v3284_v53 = vld [vmem:[#allocation4 + $0xc8] sm:$0xf0]  ;;  %v1385_v55 = vpop.f32.mrf.mxu3  ;;  %v3255_v40 = vor.u32 %v3723_v34, %v3252_v35  ;;  %v3346_v41 = vld [vmem:[#allocation4 + $0x140] sm:$0xf]  ;;  %v3418_v34 = vld [vmem:[#allocation4 + $0x1d0] sm:$0xf] }
  0xdd   :  { %v1672_v30 = vmax.f32 %v1372_v24, 0.0  ;;  %v3287_v59 = vor.u32 %v3731_v52, %v3284_v53  ;;  %v3354_v24 = vld [vmem:[#allocation4 + $0x150] sm:$0xf]  ;;  %v3744_v52 = vld [vmem:[#allocation4 + $0x124] sm:$0xf0] }
  0xde   :  { %2067 = vmatpush.bf16.msra.mxu3 %v3219_v48  ;;  %v3715_v48 = vld [vmem:[#allocation4 + $0x44] sm:$0xf] }
  0xdf   :  { %v3984_v39 = vpack.c.bf16 %v1672_v30, %v1668_v32  ;;  %v3223_v37 = vor.u32 %v3715_v48, %v3220_v49  ;;  %v3707_v30 = vld [vmem:[#allocation4 + $0x4] sm:$0xf]  ;;  %v3263_v32 = vor.u32 %v3725_v21, %v3260_v22  ;;  %v3434_v22 = vld [vmem:[#allocation4 + $0x1f0] sm:$0xf] }
  0xe0   :  { %2082 = vmatpush.bf16.msra.mxu1 %v3275_v3  ;;  %v3371_v3 = vor.u32 %v3754_v2, %v3370_v61 }
  0xe2   :  { %2068 = vmatpush.bf16.msra.mxu3 %v3211_v62  ;;  %v1399_v63 = vpop.f32.mrf.mxu2  ;;  %2092 = vmatpush.bf16.msra.mxu2 %v3371_v3  ;;  %v3314_v3 = vld [vmem:[#allocation4 + $0x100] sm:$0xf] }
  0xe3   :  { %v1400_v15 = vadd.f32 %v1399_v63, %v1385_v55  ;;  %v3322_v63 = vld [vmem:[#allocation4 + $0x110] sm:$0xf] }
  0xe4   :  { %3183 = vmatmul.msk.bf16.vlgmr.msrb.gmra.mxu2 %vm1272_vm0, %v3938_v50  ;;  %2083 = vmatpush.bf16.msra.mxu1 %v3267_v12  ;;  %v3251_v50 = vor.u32 %v3724_v27, %v3250_v26  ;;  %v3199_v26 = vor.u32 %v3709_v13, %v3196_v17  ;;  %v3750_v27 = vld [vmem:[#allocation4 + $0x154] sm:$0xf0]  ;;  %v3323_v1 = vor.u32 %v3742_v0, %v3322_v63  ;;  %v3394_v63 = vld [vmem:[#allocation4 + $0x1a0] sm:$0xf]  ;;  %v3760_v0 = vld [vmem:[#allocation4 + $0x1a4] sm:$0xf0] }
  0xe6   :  { %2069 = vmatpush.bf16.msra.mxu3 %v3203_v7  ;;  %v3711_v7 = vld [vmem:[#allocation4 + $0x24] sm:$0xf] }
  0xe7   :  { %v3207_v12 = vor.u32 %v3711_v7, %v3204_v9  ;;  %v3751_v9 = vld [vmem:[#allocation4 + $0x164] sm:$0xf] }
  0xe8   :  { %2084 = vmatpush.bf16.msra.mxu1 %v3259_v23  ;;  %v3363_v23 = vor.u32 %v3752_v58, %v3362_v19  ;;  %v3745_v58 = vld [vmem:[#allocation4 + $0x134] sm:$0xf] }
  0xea   :  { %2070 = vmatpush.bf16.msra.mxu3 %v3195_v18  ;;  %v3271_v18 = vor.u32 %v3727_v10, %v3268_v11  ;;  %2093 = vmatpush.bf16.msra.mxu2 %v3363_v23  ;;  %v3749_v11 = vld [vmem:[#allocation4 + $0x154] sm:$0xf]  ;;  %v3770_v23 = vld [vmem:[#allocation4 + $0x1f4] sm:$0xf0] }
  0xeb   :  { %v1411_v62 = vpop.f32.mrf.mxu0 }
  0xec   :  { %2085 = vmatpush.bf16.msra.mxu1 %v3251_v50  ;;  %v1425_v6 = vpop.f32.mrf.mxu1  ;;  %v1412_v14 = vadd.f32 %v1411_v62, %v1398_v5 }
  0xee   :  { %2071 = vmatpush.bf16.msra.mxu3 %v3187_v31  ;;  %v1426_v28 = vadd.f32 %v1425_v6, %v1412_v14  ;;  %v3188_v31 = vld [vmem:[#allocation4 + $0x8] sm:$0xf0]  ;;  %v3753_v6 = vld [vmem:[#allocation4 + $0x174] sm:$0xf] }
  0xef   :  { %v3191_v36 = vor.u32 %v3707_v30, %v3188_v31  ;;  %v3768_v30 = vld [vmem:[#allocation4 + $0x1e4] sm:$0xf0] }
  0xf0   :  { %2134 = vmatpush.bf16.msrb.mxu1 %v3311_v38 }
  0xf1   :  { %2072 = vmatmul.bf16.vlgmr.msra.gmra.mxu3 %v3984_v39 }
  0xf2   :  { %2120 = vmatpush.bf16.msrb.mxu3 %v3247_v33  ;;  %v3355_v33 = vor.u32 %v3750_v27, %v3354_v24  ;;  %v3435_v24 = vor.u32 %v3770_v23, %v3434_v22  ;;  %v3428_v22 = vld [vmem:[#allocation4 + $0x1e8] sm:$0xf0] }
  0xf3   :  { %v1413_v20 = vpop.f32.mrf.mxu0 }
  0xf4   :  { %2135 = vmatpush.bf16.msrb.mxu1 %v3303_v45  ;;  %v1439_v16 = vpop.f32.mrf.mxu3  ;;  %v1414_v29 = vadd.f32 %v1413_v20, %v1400_v15  ;;  %v1427_v50 = vpop.f32.mrf.mxu1  ;;  %2094 = vmatpush.bf16.msra.mxu2 %v3355_v33  ;;  %v3747_v15 = vld [vmem:[#allocation4 + $0x144] sm:$0xf]  ;;  %v3340_v20 = vld [vmem:[#allocation4 + $0x138] sm:$0xf0]  ;;  %v3741_v33 = vld [vmem:[#allocation4 + $0x114] sm:$0xf] }
  0xf5   :  { %v1440_v38 = vadd.f32 %v1439_v16, %v1426_v28  ;;  %v3348_v16 = vld [vmem:[#allocation4 + $0x148] sm:$0xf0]  ;;  %v3343_v21 = vor.u32 %v3745_v58, %v3340_v20  ;;  %2106 = vmatpush.bf16.msra.mxu0 %v3435_v24  ;;  %v3765_v24 = vld [vmem:[#allocation4 + $0x1d4] sm:$0xf] }
  0xf6   :  { %2121 = vmatpush.bf16.msrb.mxu3 %v3239_v54  ;;  %v1428_v8 = vadd.f32 %v1427_v50, %v1414_v29  ;;  %v3748_v54 = vld [vmem:[#allocation4 + $0x144] sm:$0xf0]  ;;  %v3426_v29 = vld [vmem:[#allocation4 + $0x1e0] sm:$0xf]  ;;  %v3324_v50 = vld [vmem:[#allocation4 + $0x118] sm:$0xf0] }
  0xf7   :  { %v1453_v25 = vpop.f32.mrf.mxu2  ;;  %v3347_v45 = vor.u32 %v3748_v54, %v3346_v41  ;;  %v3427_v31 = vor.u32 %v3768_v30, %v3426_v29  ;;  %v3763_v29 = vld [vmem:[#allocation4 + $0x1c4] sm:$0xf]  ;;  %v3412_v30 = vld [vmem:[#allocation4 + $0x1c8] sm:$0xf0] }
  0xf8   :  { %2136 = vmatpush.bf16.msrb.mxu1 %v3295_v51  ;;  %v1454_v48 = vadd.f32 %v1453_v25, %v1440_v38  ;;  %v3330_v51 = vld [vmem:[#allocation4 + $0x120] sm:$0xf]  ;;  %v3743_v25 = vld [vmem:[#allocation4 + $0x124] sm:$0xf]  ;;  %v3327_v38 = vor.u32 %v3741_v33, %v3324_v50  ;;  %v3404_v33 = vld [vmem:[#allocation4 + $0x1b8] sm:$0xf0] }
  0xf9   :  { %2095 = vmatpush.bf16.msra.mxu2 %v3347_v45  ;;  %v3331_v55 = vor.u32 %v3744_v52, %v3330_v51  ;;  %2107 = vmatpush.bf16.msra.mxu0 %v3427_v31  ;;  %v3415_v31 = vor.u32 %v3763_v29, %v3412_v30 }
  0xfa   :  { %2122 = vmatpush.bf16.msrb.mxu3 %v3231_v60  ;;  %v3339_v60 = vor.u32 %v3746_v47, %v3338_v46  ;;  %v3410_v46 = vld [vmem:[#allocation4 + $0x1c0] sm:$0xf]  ;;  %v3764_v47 = vld [vmem:[#allocation4 + $0x1c4] sm:$0xf0] }
  0xfb   :  { %v1467_v44 = vpop.f32.mrf.mxu0 }
  0xfc   :  { %2137 = vmatpush.bf16.msrb.mxu1 %v3287_v59  ;;  %v1441_v43 = vpop.f32.mrf.mxu3 }
  0xfd   :  { %v1442_v49 = vadd.f32 %v1441_v43, %v1428_v8  ;;  %2096 = vmatpush.bf16.msra.mxu2 %v3339_v60  ;;  %v3766_v8 = vld [vmem:[#allocation4 + $0x1d4] sm:$0xf0]  ;;  %v3739_v43 = vld [vmem:[#allocation4 + $0x104] sm:$0xf] }
  0xfe   :  { %2123 = vmatpush.bf16.msrb.mxu3 %v3223_v37  ;;  %v1468_v37 = vadd.f32 %v1467_v44, %v1454_v48  ;;  %v3419_v41 = vor.u32 %v3766_v8, %v3418_v34  ;;  %v3316_v44 = vld [vmem:[#allocation4 + $0x108] sm:$0xf0]  ;;  %v3759_v8 = vld [vmem:[#allocation4 + $0x1a4] sm:$0xf] }
  0xff   :  { %v1455_v53 = vpop.f32.mrf.mxu2  ;;  %v3319_v45 = vor.u32 %v3739_v43, %v3316_v44  ;;  %v3388_v43 = vld [vmem:[#allocation4 + $0x198] sm:$0xf0] }
 0x100   :  { %2138 = vmatpush.bf16.msrb.mxu1 %v3279_v42  ;;  %v1456_v56 = vadd.f32 %v1455_v53, %v1442_v49  ;;  %v1669_v61 = vmax.f32 %v1468_v37, 0.0  ;;  %v3364_v42 = vld [vmem:[#allocation4 + $0x168] sm:$0xf0]  ;;  %2108 = vmatpush.bf16.msra.mxu0 %v3419_v41  ;;  %v3411_v49 = vor.u32 %v3764_v47, %v3410_v46  ;;  %v3402_v53 = vld [vmem:[#allocation4 + $0x1b0] sm:$0xf] }
 0x101   :  { %2097 = vmatpush.bf16.msra.mxu2 %v3331_v55  ;;  %v3367_v10 = vor.u32 %v3751_v9, %v3364_v42  ;;  %v3762_v55 = vld [vmem:[#allocation4 + $0x1b4] sm:$0xf0]  ;;  %v3380_v46 = vld [vmem:[#allocation4 + $0x188] sm:$0xf0] }
 0x102   :  { %2124 = vmatpush.bf16.msrb.mxu3 %v3215_v4  ;;  %v3740_v4 = vld [vmem:[#allocation4 + $0x104] sm:$0xf0] }
 0x103   :  { %v1469_v57 = vpop.f32.mrf.mxu0  ;;  %v3315_v5 = vor.u32 %v3740_v4, %v3314_v3  ;;  %v3395_v3 = vor.u32 %v3760_v0, %v3394_v63 }
 0x104   :  { %2139 = vmatpush.bf16.msrb.mxu1 %v3271_v18  ;;  %v1470_v59 = vadd.f32 %v1469_v57, %v1456_v56  ;;  %v3351_v18 = vor.u32 %v3747_v15, %v3348_v16  ;;  %2109 = vmatpush.bf16.msra.mxu0 %v3411_v49  ;;  %v3403_v57 = vor.u32 %v3762_v55, %v3402_v53 }
 0x105   :  { %2098 = vmatpush.bf16.msra.mxu2 %v3323_v1 }
 0x106   :  { %2125 = vmatpush.bf16.msrb.mxu3 %v3207_v12  ;;  %v1673_v62 = vmax.f32 %v1470_v59, 0.0  ;;  %v3356_v12 = vld [vmem:[#allocation4 + $0x158] sm:$0xf0] }
 0x107   :  { %v3359_v14 = vor.u32 %v3749_v11, %v3356_v12  ;;  %v3378_v11 = vld [vmem:[#allocation4 + $0x180] sm:$0xf]  ;;  %v3756_v12 = vld [vmem:[#allocation4 + $0x184] sm:$0xf0] }
 0x108   :  { %2140 = vmatpush.bf16.msrb.mxu1 %v3263_v32  ;;  %v1677_v2 = vpack.c.bf16 %v1673_v62, %v1669_v61  ;;  %2110 = vmatpush.bf16.msra.mxu0 %v3403_v57 }
 0x109   :  { %2099 = vmatpush.bf16.msra.mxu2 %v3315_v5 }
 0x10a   :  { %2126 = vmatpush.bf16.msrb.mxu3 %v3199_v26  ;;  %2086 = vmatmul.bf16.vlgmr.msra.gmra.mxu1 %v1677_v2  ;;  %v3332_v26 = vld [vmem:[#allocation4 + $0x128] sm:$0xf0] }
 0x10b   :  { %v3335_v28 = vor.u32 %v3743_v25, %v3332_v26  ;;  %v3420_v25 = vld [vmem:[#allocation4 + $0x1d8] sm:$0xf0] }
 0x10c   :  { %2141 = vmatpush.bf16.msrb.mxu1 %v3255_v40  ;;  %v1481_v13 = vpop.f32.mrf.mxu1  ;;  %2111 = vmatpush.bf16.msra.mxu0 %v3395_v3  ;;  %v3423_v26 = vor.u32 %v3765_v24, %v3420_v25  ;;  %v3779_v24 = vld [vmem:[%s4048_s3 + $0x40] sm:$0xff] }
 0x10e   :  { %2127 = vmatpush.bf16.msrb.mxu3 %v3191_v36 }
 0x10f   :  { %v1509_v17 = vpop.f32.mrf.mxu0 }
 0x111   :  { %2128 = vmatmul.bf16.vlgmr.msrb.gmra.mxu3 %v3984_v39  ;;  %v3372_v39 = vld [vmem:[#allocation4 + $0x178] sm:$0xf0] }
 0x112   :  { %v3375_v7 = vor.u32 %v3753_v6, %v3372_v39  ;;  %v3386_v6 = vld [vmem:[#allocation4 + $0x190] sm:$0xf]  ;;  %v3758_v39 = vld [vmem:[#allocation4 + $0x194] sm:$0xf0] }
 0x113   :  { %v3387_v42 = vor.u32 %v3758_v39, %v3386_v6 }
 0x114   :  { %2148 = vmatpush.bf16.msrb.mxu2 %v3375_v7  ;;  %v1495_v19 = vpop.f32.mrf.mxu3  ;;  %v1483_v27 = vpop.f32.mrf.mxu1 }
 0x115   :  { %v1496_v40 = vadd.f32 %v1495_v19, %v1481_v13  ;;  %2112 = vmatpush.bf16.msra.mxu0 %v3387_v42  ;;  %v3436_v19 = vld [vmem:[#allocation4 + $0x1f8] sm:$0xf0]  ;;  %v3776_v42 = vld [vmem:[%s4048_s3 + $0x28] sm:$0xff] }
 0x117   :  { %v1511_v32 = vpop.f32.mrf.mxu0  ;;  %v1523_v35 = vpop.f32.mrf.mxu2  ;;  %v1510_v60 = vadd.f32 %v1509_v17, %v1496_v40  ;;  %v3396_v40 = vld [vmem:[#allocation4 + $0x1a8] sm:$0xf0] }
 0x118   :  { %2149 = vmatpush.bf16.msrb.mxu2 %v3367_v10  ;;  %v3399_v41 = vor.u32 %v3759_v8, %v3396_v40 }
 0x119   :  { %v1524_v37 = vadd.f32 %v1523_v35, %v1510_v60 }
 0x11a   :  { %2142 = vmatmul.bf16.vlgmr.msrb.gmra.mxu1 %v1677_v2 }
 0x11c   :  { %2150 = vmatpush.bf16.msrb.mxu2 %v3359_v14  ;;  %v1497_v36 = vpop.f32.mrf.mxu3  ;;  %v3379_v14 = vor.u32 %v3756_v12, %v3378_v11  ;;  %v3774_v11 = vld [vmem:[%s4048_s3 + $0x18] sm:$0xff] }
 0x11d   :  { %v1498_v48 = vadd.f32 %v1497_v36, %v1483_v27  ;;  %v3786_v12 = vld [vmem:[%s4048_s3 + $0x78] sm:$0xff] }
 0x11e   :  { %2113 = vmatpush.bf16.msra.mxu0 %v3379_v14  ;;  %2328 = vmatpush.bf16.msra.mxu1 %v3786_v12  ;;  %v3785_v14 = vld [vmem:[%s4048_s3 + $0x70] sm:$0xff] }
 0x11f   :  { %v1565_v51 = vpop.f32.mrf.mxu0  ;;  %v1512_v56 = vadd.f32 %v1511_v32, %v1498_v48  ;;  %v1525_v59 = vpop.f32.mrf.mxu2  ;;  %v3761_v32 = vld [vmem:[#allocation4 + $0x1b4] sm:$0xf] }
 0x120   :  { %2151 = vmatpush.bf16.msrb.mxu2 %v3351_v18  ;;  %v3769_v18 = vld [vmem:[#allocation4 + $0x1f4] sm:$0xf]  ;;  %v3407_v50 = vor.u32 %v3761_v32, %v3404_v33 }
 0x121   :  { %v1526_v1 = vadd.f32 %v1525_v59, %v1512_v56  ;;  %v3439_v58 = vor.u32 %v3769_v18, %v3436_v19  ;;  %v3783_v18 = vld [vmem:[%s4048_s3 + $0x60] sm:$0xff]  ;;  %v3782_v19 = vld [vmem:[%s4048_s3 + $0x58] sm:$0xff] }
 0x122   :  { %2329 = vmatpush.bf16.msra.mxu1 %v3785_v14 }
 0x123   :  { %2162 = vmatpush.bf16.msrb.mxu0 %v3439_v58  ;;  %v3781_v58 = vld [vmem:[%s4048_s3 + $0x50] sm:$0xff] }
 0x124   :  { %2152 = vmatpush.bf16.msrb.mxu2 %v3343_v21  ;;  %v3767_v21 = vld [vmem:[#allocation4 + $0x1e4] sm:$0xf] }
 0x125   :  { %v3431_v23 = vor.u32 %v3767_v21, %v3428_v22  ;;  %v3780_v22 = vld [vmem:[%s4048_s3 + $0x48] sm:$0xff] }
 0x127   :  { %v1567_v10 = vpop.f32.mrf.mxu0  ;;  %2163 = vmatpush.bf16.msrb.mxu0 %v3431_v23 }
 0x128   :  { %2153 = vmatpush.bf16.msrb.mxu2 %v3335_v28 }
 0x12b   :  { %2164 = vmatpush.bf16.msrb.mxu0 %v3423_v26 }
 0x12c   :  { %v1537_v54 = vpop.f32.mrf.mxu1  ;;  %2154 = vmatpush.bf16.msrb.mxu2 %v3327_v38 }
 0x12d   :  { %v1538_v61 = vadd.f32 %v1537_v54, %v1524_v37  ;;  %v3757_v54 = vld [vmem:[#allocation4 + $0x194] sm:$0xf] }
 0x12e   :  { %v3391_v44 = vor.u32 %v3757_v54, %v3388_v43 }
 0x12f   :  { %2165 = vmatpush.bf16.msrb.mxu0 %v3415_v31 }
 0x130   :  { %2155 = vmatpush.bf16.msrb.mxu2 %v3319_v45  ;;  %v3755_v45 = vld [vmem:[#allocation4 + $0x184] sm:$0xf] }
 0x131   :  { %v3383_v48 = vor.u32 %v3755_v45, %v3380_v46 }
 0x133   :  { %v1593_v27 = vpop.f32.mrf.mxu0  ;;  %2166 = vmatpush.bf16.msrb.mxu0 %v3407_v50 }
 0x134   :  { %v1551_v52 = vpop.f32.mrf.mxu3  ;;  %v1539_v62 = vpop.f32.mrf.mxu1 }
 0x135   :  { %v1552_v2 = vadd.f32 %v1551_v52, %v1538_v61  ;;  %v1540_v4 = vadd.f32 %v1539_v62, %v1526_v1 }
 0x137   :  { %v1566_v7 = vadd.f32 %v1565_v51, %v1552_v2  ;;  %v1579_v17 = vpop.f32.mrf.mxu2  ;;  %2167 = vmatpush.bf16.msrb.mxu0 %v3399_v41 }
 0x138   :  { %v1594_v60 = vadd.f32 %v1593_v27, %v1579_v17  ;;  %v3771_v17 = vld [vmem:[%s4048_s3] sm:$0xff] }
 0x139   :  { %v1670_v15 = vmax.f32 %v1566_v7, 0.0  ;;  %v3778_v7 = vld [vmem:[%s4048_s3 + $0x38] sm:$0xff] }
 0x13a   :  { %2314 = vmatpush.bf16.msra.mxu3 %v3778_v7 }
 0x13b   :  { %v1595_v36 = vpop.f32.mrf.mxu0  ;;  %2168 = vmatpush.bf16.msrb.mxu0 %v3391_v44 }
 0x13c   :  { %v1553_v5 = vpop.f32.mrf.mxu3 }
 0x13d   :  { %v1554_v9 = vadd.f32 %v1553_v5, %v1540_v4 }
 0x13f   :  { %v1568_v13 = vadd.f32 %v1567_v10, %v1554_v9  ;;  %v1581_v28 = vpop.f32.mrf.mxu2  ;;  %2169 = vmatpush.bf16.msrb.mxu0 %v3383_v48  ;;  %v3777_v9 = vld [vmem:[%s4048_s3 + $0x30] sm:$0xff]  ;;  %v3775_v10 = vld [vmem:[%s4048_s3 + $0x20] sm:$0xff] }
 0x140   :  { %v1596_v52 = vadd.f32 %v1595_v36, %v1581_v28  ;;  %2315 = vmatpush.bf16.msra.mxu3 %v3777_v9 }
 0x141   :  { %v1674_v16 = vmax.f32 %v1568_v13, 0.0  ;;  %v3773_v13 = vld [vmem:[%s4048_s3 + $0x10] sm:$0xff] }
 0x143   :  { %v1678_v20 = vpack.c.bf16 %v1674_v16, %v1670_v15  ;;  %v3772_v15 = vld [vmem:[%s4048_s3 + $0x8] sm:$0xff] }
 0x144   :  { %2316 = vmatpush.bf16.msra.mxu3 %v3776_v42  ;;  %v3784_v16 = vld [vmem:[%s4048_s3 + $0x68] sm:$0xff] }
 0x145   :  { %2100 = vmatmul.bf16.vlgmr.msra.gmra.mxu2 %v1678_v20  ;;  %2330 = vmatpush.bf16.msra.mxu1 %v3784_v16 }
 0x148   :  { %2317 = vmatpush.bf16.msra.mxu3 %v3775_v10 }
 0x149   :  { %2331 = vmatpush.bf16.msra.mxu1 %v3783_v18 }
 0x14c   :  { %v1607_v34 = vpop.f32.mrf.mxu1  ;;  %2318 = vmatpush.bf16.msra.mxu3 %v3774_v11 }
 0x14d   :  { %v1608_v53 = vadd.f32 %v1607_v34, %v1594_v60  ;;  %2332 = vmatpush.bf16.msra.mxu1 %v3782_v19 }
 0x150   :  { %2319 = vmatpush.bf16.msra.mxu3 %v3773_v13 }
 0x151   :  { %2333 = vmatpush.bf16.msra.mxu1 %v3781_v58 }
 0x153   :  { %v1649_v51 = vpop.f32.mrf.mxu0 }
 0x154   :  { %v1621_v38 = vpop.f32.mrf.mxu3  ;;  %v1609_v49 = vpop.f32.mrf.mxu1  ;;  %2320 = vmatpush.bf16.msra.mxu3 %v3772_v15 }
 0x155   :  { %2156 = vmatmul.bf16.vlgmr.msrb.gmra.mxu2 %v1678_v20  ;;  %v1622_v37 = vadd.f32 %v1621_v38, %v1608_v53  ;;  %v1610_v56 = vadd.f32 %v1609_v49, %v1596_v52  ;;  %2334 = vmatpush.bf16.msra.mxu1 %v3780_v22 }
 0x157   :  { %v1635_v35 = vpop.f32.mrf.mxu2 }
 0x158   :  { %v1636_v61 = vadd.f32 %v1635_v35, %v1622_v37  ;;  %2321 = vmatpush.bf16.msra.mxu3 %v3771_v17 }
 0x159   :  { %2335 = vmatpush.bf16.msra.mxu1 %v3779_v24 }
 0x15a   :  { %v1650_v0 = vadd.f32 %v1649_v51, %v1636_v61 }
 0x15b   :  { %v1651_v63 = vpop.f32.mrf.mxu0 }
 0x15c   :  { %v1623_v55 = vpop.f32.mrf.mxu3 }
 0x15d   :  { %v1624_v57 = vadd.f32 %v1623_v55, %v1610_v56 }
 0x15f   :  { %v1637_v47 = vpop.f32.mrf.mxu2 }
 0x160   :  { %v1638_v62 = vadd.f32 %v1637_v47, %v1624_v57  ;;  %v3793_v57 = vld [vmem:[%s4049_s4] ss:$0 sm:$0xff] }
 0x162   :  { %v1652_v1 = vadd.f32 %v1651_v63, %v1638_v62 }
 0x167   :  { %v1663_v59 = vpop.f32.mrf.mxu2 }
 0x168   :  { %v1664_v2 = vadd.f32 %v1663_v59, %v1650_v0 }
 0x16a   :  { %v1671_v5 = vmax.f32 %v1664_v2, 0.0 }
 0x16f   :  { %v1665_v3 = vpop.f32.mrf.mxu2 }
 0x170   :  { %v1666_v4 = vadd.f32 %v1665_v3, %v1652_v1 }
 0x172   :  { %v1675_v6 = vmax.f32 %v1666_v4, 0.0 }
 0x174   :  { %v1679_v39 = vpack.c.bf16 %v1675_v6, %v1671_v5  ;;  %v2073_v23 = vpop.f32.mrf.mxu3 }
 0x176   :  { %2114 = vmatmul.bf16.vlgmr.msra.gmra.mxu0 %v1679_v39 }
 0x17c   :  { %v2075_v28 = vpop.f32.mrf.mxu3 }
 0x186   :  { %2170 = vmatmul.bf16.vlgmr.msrb.gmra.mxu0 %v1679_v39 }
 0x187   :  { %v2087_v20 = vpop.f32.mrf.mxu1 }
 0x188   :  { %v2088_v29 = vadd.f32 %v2087_v20, %v2073_v23 }
 0x18f   :  { %v2089_v25 = vpop.f32.mrf.mxu1 }
 0x190   :  { %v2090_v30 = vadd.f32 %v2089_v25, %v2075_v28 }
 0x194   :  { %v2129_v36 = vpop.f32.mrf.mxu3 }
 0x197   :  { %v2143_v50 = vpop.f32.mrf.mxu1 }
 0x198   :  { %v2144_v44 = vadd.f32 %v2143_v50, %v2129_v36 }
 0x19c   :  { %v2131_v45 = vpop.f32.mrf.mxu3 }
 0x19f   :  { %v2145_v43 = vpop.f32.mrf.mxu1 }
 0x1a0   :  { %v2146_v47 = vadd.f32 %v2145_v43, %v2131_v45 }
 0x1c8   :  { %v2101_v21 = vpop.f32.mrf.mxu2 }
 0x1c9   :  { %v2102_v31 = vadd.f32 %v2101_v21, %v2088_v29 }
 0x1d0   :  { %v2103_v26 = vpop.f32.mrf.mxu2 }
 0x1d1   :  { %v2104_v32 = vadd.f32 %v2103_v26, %v2090_v30 }
 0x1d8   :  { %v2157_v38 = vpop.f32.mrf.mxu2 }
 0x1d9   :  { %v2158_v60 = vadd.f32 %v2157_v38, %v2144_v44 }
 0x1e0   :  { %v2159_v46 = vpop.f32.mrf.mxu2 }
 0x1e1   :  { %v2160_v48 = vadd.f32 %v2159_v46, %v2146_v47 }
 0x1f3   :  { %v2115_v27 = vpop.f32.mrf.mxu0 }
 0x1f4   :  { %v2116_v33 = vadd.f32 %v2115_v27, %v2102_v31 }
 0x1f6   :  { %v2176_v8 = vmax.f32 %v2116_v33, 0.0 }
 0x1fb   :  { %v2117_v34 = vpop.f32.mrf.mxu0 }
 0x1fc   :  { %v2118_v35 = vadd.f32 %v2117_v34, %v2104_v32 }
 0x1fe   :  { %v2178_v40 = vmax.f32 %v2118_v35, 0.0 }
 0x200   :  { %v2180_v41 = vpack.c.bf16 %v2178_v40, %v2176_v8 }
 0x202   :  { %2322 = vmatmul.bf16.vlgmr.msra.gmra.mxu3 %v2180_v41 }
 0x203   :  { %v2171_v54 = vpop.f32.mrf.mxu0 }
 0x204   :  { %v2172_v49 = vadd.f32 %v2171_v54, %v2158_v60 }
 0x206   :  { %v2177_v53 = vmax.f32 %v2172_v49, 0.0 }
 0x20b   :  { %v2173_v51 = vpop.f32.mrf.mxu0 }
 0x20c   :  { %v2174_v52 = vadd.f32 %v2173_v51, %v2160_v48 }
 0x20e   :  { %v2179_v55 = vmax.f32 %v2174_v52, 0.0 }
 0x210   :  { %v2181_v37 = vpack.c.bf16 %v2179_v55, %v2177_v53 }
 0x212   :  { %2336 = vmatmul.bf16.vlgmr.msra.gmra.mxu1 %v2181_v37 }
 0x285   :  { %v2323_v56 = vpop.f32.mrf.mxu3 }
 0x286   :  { %v2324_v59 = vadd.f32 %v3793_v57, %v2323_v56 }
 0x28d   :  { %v2325_v63 = vpop.f32.mrf.mxu3 }
 0x28e   :  { %v2326_v0 = vadd.f32 %v3793_v57, %v2325_v63 }
 0x28f   :  { %v2337_v61 = vpop.f32.mrf.mxu1 }
 0x290   :  { %v2338_v62 = vadd.f32 %v2337_v61, %v2324_v59 }
 0x292   :  { %2342 = vmax.xlane.f32.xlu0 %v2338_v62 }
 0x297   :  { %v2339_v1 = vpop.f32.mrf.mxu1 }
 0x298   :  { %v2340_v2 = vadd.f32 %v2339_v1, %v2326_v0 }
 0x29a   :  { %2344 = vmax.xlane.f32.xlu0 %v2340_v2 }
 0x305   :  { %v2343_v3 = vpop.xlane.xlu0 %2342 }
 0x306   :  { %v2346_v4 = vsub.f32 %v2338_v62, %v2343_v3 }
 0x308   :  { %v2348_v5 = vmul.f32 1.442695, %v2346_v4 }
 0x30a   :  { %3794 = vpow2.f32 %v2348_v5 }
 0x30d   :  { %v2345_v6 = vpop.xlane.xlu0 %2344 }
 0x30e   :  { %v2347_v39 = vsub.f32 %v2340_v2, %v2345_v6 }
 0x310   :  { %v3795_v7 = vpop.eup %3794  ;;  %v2350_v9 = vmul.f32 1.442695, %v2347_v39 }
 0x311   :  { %2352 = vadd.xlane.f32.xlu1 %v3795_v7 }
 0x312   :  { %3796 = vpow2.f32 %v2350_v9 }
 0x318   :  { %v3797_v42 = vpop.eup %3796 }
 0x319   :  { %2354 = vadd.xlane.f32.xlu1 %v3797_v42 }
 0x384   :  { %v2353_v10 = vpop.xlane.xlu1 %2352 }
 0x385   :  { %3798 = vrcp.f32 %v2353_v10 }
 0x38b   :  { %v3799_v11 = vpop.eup %3798 }
 0x38c   :  { %v2358_v12 = vmul.f32 %v3799_v11, %v3795_v7  ;;  %v2355_v13 = vpop.xlane.xlu1 %2354 }
 0x38d   :  { %3800 = vrcp.f32 %v2355_v13 }
 0x38e   :  { %2360 = vst [vmem:[%s4050_s5] sm:$0xff] %v2358_v12 }
 0x393   :  { %v3801_v14 = vpop.eup %3800 }
 0x394   :  { %v2359_v15 = vmul.f32 %v3801_v14, %v3797_v42 }
 0x396   :  { %2361 = vst [vmem:[%s4050_s5 + $0x8] sm:$0xff] %v2359_v15 }
 0x397   :  { %2366 = vsyncpa [#allocation3], 1 }
 0x398   :  { %2367 = vsyncpa [#allocation5], 1 }

</bundles_post_ra>
